<compile_context>
chip_gen: v6e
topology: v6e:2x2x1
jax: 0.10.0
libtpu: 0.0.40
codegen_flags: <defaults>
</compile_context>

<pallas_src>
import math
import functools

import jax
import jax.numpy as jnp
from jax.experimental import pallas as pl
from jax.experimental.pallas import tpu as pltpu


def _layer_norm(h, w, b, eps=1e-5):
    # f32 math (keep VPU/EUP on the native f32 path, esp. on v5e).
    mu = jnp.mean(h, axis=-1, keepdims=True)
    var = jnp.mean((h - mu) ** 2, axis=-1, keepdims=True)
    return (h - mu) * jax.lax.rsqrt(var + eps) * w + b


def _gelu_tanh(h):
    # TODO(synk): PyTorch nn.GELU() default is the exact erf form; using the
    # tanh approximation for robust Mosaic lowering (difference ~1e-3 rel).
    return 0.5 * h * (1.0 + jnp.tanh(0.7978845608028654 * (h + 0.044715 * h * h * h)))


def block_kernel(x_ref,
                 ln1_w_ref, ln1_b_ref,
                 w_qkv_ref, b_qkv_ref,
                 w_proj_ref, b_proj_ref,
                 ln2_w_ref, ln2_b_ref,
                 w_fc_ref, b_fc_ref,
                 w_fc2_ref, b_fc2_ref,
                 out_ref,
                 *, n_head):
    Bb, T, C = x_ref.shape
    hd = C // n_head
    scale = 1.0 / math.sqrt(hd)

    x2 = x_ref[...].reshape(Bb * T, C)                     # (Bb*T, C) f32

    # ----------------- attention branch -----------------
    h = _layer_norm(x2, ln1_w_ref[0], ln1_b_ref[0])        # f32
    # Single fused QKV matmul: bf16 operands, f32 accumulation on the MXU.
    qkv = jnp.dot(h.astype(jnp.bfloat16), w_qkv_ref[...],
                  preferred_element_type=jnp.float32) + b_qkv_ref[0]   # (Bb*T, 3C)

    # Causal mask (f32 path; -1e30 sentinel never touches bf16).
    row = jax.lax.broadcasted_iota(jnp.int32, (1, T, T), 1)
    col = jax.lax.broadcasted_iota(jnp.int32, (1, T, T), 2)
    causal = row >= col
    neg_inf = jnp.float32(-1e30)

    w_proj = w_proj_ref[...]                               # (C, C) bf16
    attn_proj = jnp.zeros((Bb * T, C), jnp.float32)

    for hi in range(n_head):
        q_off, k_off, v_off = hi * hd, C + hi * hd, 2 * C + hi * hd
        qh = qkv[:, q_off:q_off + hd].reshape(Bb, T, hd).astype(jnp.bfloat16)
        kh = qkv[:, k_off:k_off + hd].reshape(Bb, T, hd).astype(jnp.bfloat16)
        vh = qkv[:, v_off:v_off + hd].reshape(Bb, T, hd).astype(jnp.bfloat16)

        # Batched over the Bb sequences in this block; contracts k's last dim
        # directly (no materialised transpose).
        s = jnp.einsum('bqd,bkd->bqk', qh, kh,
                       preferred_element_type=jnp.float32) * scale     # (Bb,T,T) f32
        s = jnp.where(causal, s, neg_inf)
        s = s - jnp.max(s, axis=-1, keepdims=True)
        p = jnp.exp(s)
        p = p * pl.reciprocal(jnp.sum(p, axis=-1, keepdims=True), approx=True)

        hout = jnp.einsum('bqk,bkd->bqd', p.astype(jnp.bfloat16), vh,
                          preferred_element_type=jnp.float32)          # (Bb,T,hd)

        # Fold the output projection into the head loop (no concatenate).
        attn_proj = attn_proj + jnp.dot(
            hout.reshape(Bb * T, hd).astype(jnp.bfloat16),
            w_proj[hi * hd:(hi + 1) * hd, :],
            preferred_element_type=jnp.float32)

    x2 = x2 + attn_proj + b_proj_ref[0]

    # ----------------- MLP branch -----------------
    h = _layer_norm(x2, ln2_w_ref[0], ln2_b_ref[0])
    h = jnp.dot(h.astype(jnp.bfloat16), w_fc_ref[...],
                preferred_element_type=jnp.float32) + b_fc_ref[0]
    h = _gelu_tanh(h)                                       # f32
    h = jnp.dot(h.astype(jnp.bfloat16), w_fc2_ref[...],
                preferred_element_type=jnp.float32) + b_fc2_ref[0]

    out_ref[...] = (x2 + h).reshape(Bb, T, C)


def transformer_block(x, params, *, n_head, block_b=None):
    B, T, C = x.shape
    if block_b is None:
        block_b = B                    # whole batch per grid step at demo sizes
    assert B % block_b == 0

    (ln1_w, ln1_b, w_qkv, b_qkv, w_proj, b_proj,
     ln2_w, ln2_b, w_fc, b_fc, w_fc2, b_fc2) = params

    # Cast matmul weights to bf16 once in the wrapper (halves weight DMA,
    # doubles MXU throughput); LN params and biases stay f32.
    kernel_params = (
        ln1_w, ln1_b,
        w_qkv.astype(jnp.bfloat16), b_qkv,
        w_proj.astype(jnp.bfloat16), b_proj,
        ln2_w, ln2_b,
        w_fc.astype(jnp.bfloat16), b_fc,
        w_fc2.astype(jnp.bfloat16), b_fc2,
    )

    def full_spec(arr):
        nd = arr.ndim
        return pl.BlockSpec(arr.shape, lambda i, _nd=nd: (0,) * _nd)

    in_specs = [pl.BlockSpec((block_b, T, C), lambda i: (i, 0, 0))] + [
        full_spec(p) for p in kernel_params
    ]
    out_specs = pl.BlockSpec((block_b, T, C), lambda i: (i, 0, 0))

    kernel = functools.partial(block_kernel, n_head=n_head)

    return pl.pallas_call(
        kernel,
        out_shape=jax.ShapeDtypeStruct((B, T, C), jnp.float32),
        grid_spec=pltpu.PrefetchScalarGridSpec(
            num_scalar_prefetch=0,
            grid=(B // block_b,),
            in_specs=in_specs,
            out_specs=out_specs,
        ),
        compiler_params=pltpu.CompilerParams(
            dimension_semantics=("parallel",)),
    )(x, *kernel_params)


# ---------------- pure-JAX f32 reference (for verification) ----------------
def reference_block(x, params, *, n_head):
    (ln1_w, ln1_b, w_qkv, b_qkv, w_proj, b_proj,
     ln2_w, ln2_b, w_fc, b_fc, w_fc2, b_fc2) = params
    B, T, C = x.shape
    hd = C // n_head

    def ln(h, w, b):
        mu = jnp.mean(h, axis=-1, keepdims=True)
        var = jnp.mean((h - mu) ** 2, axis=-1, keepdims=True)
        return (h - mu) / jnp.sqrt(var + 1e-5) * w[0] + b[0]

    h = ln(x, ln1_w, ln1_b)
    qkv = h @ w_qkv + b_qkv[0]
    q, k, v = jnp.split(qkv, 3, axis=-1)
    q = q.reshape(B, T, n_head, hd).transpose(0, 2, 1, 3)
    k = k.reshape(B, T, n_head, hd).transpose(0, 2, 1, 3)
    v = v.reshape(B, T, n_head, hd).transpose(0, 2, 1, 3)
    s = jnp.einsum("bhqd,bhkd->bhqk", q, k) / math.sqrt(hd)
    mask = jnp.tril(jnp.ones((T, T), dtype=bool))
    s = jnp.where(mask, s, -1e30)
    p = jax.nn.softmax(s, axis=-1)
    a = jnp.einsum("bhqk,bhkd->bhqd", p, v).transpose(0, 2, 1, 3).reshape(B, T, C)
    x = x + (a @ w_proj + b_proj[0])

    h = ln(x, ln2_w, ln2_b)
    h = h @ w_fc + b_fc[0]
    h = 0.5 * h * (1.0 + jnp.tanh(0.7978845608028654 * (h + 0.044715 * h ** 3)))
    h = h @ w_fc2 + b_fc2[0]
    return x + h


if __name__ == "__main__":
    # small config consistent with the module: n_embed=32, n_head=4, seq=8, batch=2
    B, T, C, n_head = 2, 8, 32, 4
    key = jax.random.PRNGKey(0)
    ks = jax.random.split(key, 16)

    x = jax.random.normal(ks[0], (B, T, C), dtype=jnp.float32)

    def randn(k, shape, scale=0.02):
        return (scale * jax.random.normal(k, shape)).astype(jnp.float32)

    params = (
        jnp.ones((1, C), jnp.float32),          # ln1 weight
        jnp.zeros((1, C), jnp.float32),         # ln1 bias
        randn(ks[1], (C, 3 * C)),               # W_qkv  (in, out)
        randn(ks[2], (1, 3 * C)),               # b_qkv
        randn(ks[3], (C, C)),                   # W_proj
        randn(ks[4], (1, C)),                   # b_proj
        jnp.ones((1, C), jnp.float32),          # ln2 weight
        jnp.zeros((1, C), jnp.float32),         # ln2 bias
        randn(ks[5], (C, 4 * C)),               # W_fc
        randn(ks[6], (1, 4 * C)),               # b_fc
        randn(ks[7], (4 * C, C)),               # W_fc2 (projection back)
        randn(ks[8], (1, C)),                   # b_fc2
    )

    out = transformer_block(x, params, n_head=n_head)
    out = jax.block_until_ready(out)

    ref = reference_block(x, params, n_head=n_head)
    assert out.shape == (B, T, C)
    # bf16 MXU inputs with f32 accumulation -> ~1e-3 abs error vs. f32 ref.
    assert jnp.allclose(out, ref, atol=2e-2, rtol=2e-2), "mismatch vs reference"

    print("KERNEL_OK")
</pallas_src>

<mosaic_0001>
module attributes {stable_mosaic.version = 11 : i64} {
  func.func @block_kernel(%arg0: i32, %arg1: memref<2x8x32xf32, #tpu.memory_space<vmem>>, %arg2: memref<1x32xf32, #tpu.memory_space<vmem>>, %arg3: memref<1x32xf32, #tpu.memory_space<vmem>>, %arg4: memref<32x96xbf16, #tpu.memory_space<vmem>>, %arg5: memref<1x96xf32, #tpu.memory_space<vmem>>, %arg6: memref<32x32xbf16, #tpu.memory_space<vmem>>, %arg7: memref<1x32xf32, #tpu.memory_space<vmem>>, %arg8: memref<1x32xf32, #tpu.memory_space<vmem>>, %arg9: memref<1x32xf32, #tpu.memory_space<vmem>>, %arg10: memref<32x128xbf16, #tpu.memory_space<vmem>>, %arg11: memref<1x128xf32, #tpu.memory_space<vmem>>, %arg12: memref<128x32xbf16, #tpu.memory_space<vmem>>, %arg13: memref<1x32xf32, #tpu.memory_space<vmem>>, %arg14: memref<2x8x32xf32, #tpu.memory_space<vmem>>) attributes {dimension_semantics = [#tpu.dimension_semantics<parallel>], iteration_bounds = array<i64: 1>, scalar_prefetch = 0 : i64, scratch_operands = 0 : i64, tpu.core_type = #tpu.core_type<tc>, window_params = [{transform_indices = @transform_0, window_bounds = array<i64: 2, 8, 32>}, {pipeline_mode = #tpu.pipeline_mode<synchronous>, transform_indices = @transform_1, window_bounds = array<i64: 1, 32>}, {pipeline_mode = #tpu.pipeline_mode<synchronous>, transform_indices = @transform_2, window_bounds = array<i64: 1, 32>}, {pipeline_mode = #tpu.pipeline_mode<synchronous>, transform_indices = @transform_3, window_bounds = array<i64: 32, 96>}, {pipeline_mode = #tpu.pipeline_mode<synchronous>, transform_indices = @transform_4, window_bounds = array<i64: 1, 96>}, {pipeline_mode = #tpu.pipeline_mode<synchronous>, transform_indices = @transform_5, window_bounds = array<i64: 32, 32>}, {pipeline_mode = #tpu.pipeline_mode<synchronous>, transform_indices = @transform_6, window_bounds = array<i64: 1, 32>}, {pipeline_mode = #tpu.pipeline_mode<synchronous>, transform_indices = @transform_7, window_bounds = array<i64: 1, 32>}, {pipeline_mode = #tpu.pipeline_mode<synchronous>, transform_indices = @transform_8, window_bounds = array<i64: 1, 32>}, {pipeline_mode = #tpu.pipeline_mode<synchronous>, transform_indices = @transform_9, window_bounds = array<i64: 32, 128>}, {pipeline_mode = #tpu.pipeline_mode<synchronous>, transform_indices = @transform_10, window_bounds = array<i64: 1, 128>}, {pipeline_mode = #tpu.pipeline_mode<synchronous>, transform_indices = @transform_11, window_bounds = array<i64: 128, 32>}, {pipeline_mode = #tpu.pipeline_mode<synchronous>, transform_indices = @transform_12, window_bounds = array<i64: 1, 32>}, {transform_indices = @transform_13, window_bounds = array<i64: 2, 8, 32>}]} {
    %c0 = arith.constant 0 : index
    %c0_0 = arith.constant 0 : index
    %c0_1 = arith.constant 0 : index
    %0 = vector.load %arg1[%c0, %c0_0, %c0_1] : memref<2x8x32xf32, #tpu.memory_space<vmem>>, vector<2x8x32xf32>
    %1 = vector.shape_cast %0 : vector<2x8x32xf32> to vector<16x32xf32>
    %c0_2 = arith.constant 0 : index
    %c0_3 = arith.constant 0 : index
    %2 = vector.load %arg2[%c0_2, %c0_3] : memref<1x32xf32, #tpu.memory_space<vmem>>, vector<1x32xf32>
    %3 = vector.shape_cast %2 : vector<1x32xf32> to vector<32xf32>
    %c0_4 = arith.constant 0 : index
    %c0_5 = arith.constant 0 : index
    %4 = vector.load %arg3[%c0_4, %c0_5] : memref<1x32xf32, #tpu.memory_space<vmem>>, vector<1x32xf32>
    %5 = vector.shape_cast %4 : vector<1x32xf32> to vector<32xf32>
    %cst = arith.constant dense<0.000000e+00> : vector<16xf32>
    %6 = vector.multi_reduction <add>, %1, %cst [1] : vector<16x32xf32> to vector<16xf32>
    %7 = vector.shape_cast %6 : vector<16xf32> to vector<16x1xf32>
    %cst_6 = arith.constant 3.200000e+01 : f32
    %8 = vector.broadcast %cst_6 : f32 to vector<16x1xf32>
    %9 = arith.divf %7, %8 : vector<16x1xf32>
    %10 = vector.broadcast %9 : vector<16x1xf32> to vector<16x32xf32>
    %11 = arith.subf %1, %10 : vector<16x32xf32>
    %12 = arith.mulf %11, %11 : vector<16x32xf32>
    %cst_7 = arith.constant dense<0.000000e+00> : vector<16xf32>
    %13 = vector.multi_reduction <add>, %12, %cst_7 [1] : vector<16x32xf32> to vector<16xf32>
    %14 = vector.shape_cast %13 : vector<16xf32> to vector<16x1xf32>
    %cst_8 = arith.constant 3.200000e+01 : f32
    %15 = vector.broadcast %cst_8 : f32 to vector<16x1xf32>
    %16 = arith.divf %14, %15 : vector<16x1xf32>
    %17 = vector.broadcast %9 : vector<16x1xf32> to vector<16x32xf32>
    %18 = arith.subf %1, %17 : vector<16x32xf32>
    %cst_9 = arith.constant 9.99999974E-6 : f32
    %19 = vector.broadcast %cst_9 : f32 to vector<16x1xf32>
    %20 = arith.addf %16, %19 : vector<16x1xf32>
    %21 = math.rsqrt %20 : vector<16x1xf32>
    %22 = vector.broadcast %21 : vector<16x1xf32> to vector<16x32xf32>
    %23 = arith.mulf %18, %22 : vector<16x32xf32>
    %24 = vector.shape_cast %3 : vector<32xf32> to vector<1x32xf32>
    %25 = vector.broadcast %24 : vector<1x32xf32> to vector<16x32xf32>
    %26 = arith.mulf %23, %25 : vector<16x32xf32>
    %27 = vector.shape_cast %5 : vector<32xf32> to vector<1x32xf32>
    %28 = vector.broadcast %27 : vector<1x32xf32> to vector<16x32xf32>
    %29 = arith.addf %26, %28 : vector<16x32xf32>
    %30 = arith.truncf %29 : vector<16x32xf32> to vector<16x32xbf16>
    %c0_10 = arith.constant 0 : index
    %c0_11 = arith.constant 0 : index
    %31 = vector.load %arg4[%c0_10, %c0_11] : memref<32x96xbf16, #tpu.memory_space<vmem>>, vector<32x96xbf16>
    %cst_12 = arith.constant dense<0.000000e+00> : vector<16x96xf32>
    %32 = tpu.matmul %30, %31, %cst_12 {dimension_numbers = #tpu.dot_dimension_numbers<[1], [0], [0], [1], [0, 0, 1, 1], [], []>} : vector<16x32xbf16>, vector<32x96xbf16>, vector<16x96xf32> -> vector<16x96xf32>
    %c0_13 = arith.constant 0 : index
    %c0_14 = arith.constant 0 : index
    %33 = vector.load %arg5[%c0_13, %c0_14] : memref<1x96xf32, #tpu.memory_space<vmem>>, vector<1x96xf32>
    %34 = vector.shape_cast %33 : vector<1x96xf32> to vector<96xf32>
    %35 = vector.shape_cast %34 : vector<96xf32> to vector<1x96xf32>
    %36 = vector.broadcast %35 : vector<1x96xf32> to vector<16x96xf32>
    %37 = arith.addf %32, %36 : vector<16x96xf32>
    %38 = tpu.iota {dimensions = array<i32: 1>} : vector<1x8x8xi32>
    %39 = tpu.iota {dimensions = array<i32: 2>} : vector<1x8x8xi32>
    %40 = arith.cmpi sge, %38, %39 : vector<1x8x8xi32>
    %c0_15 = arith.constant 0 : index
    %c0_16 = arith.constant 0 : index
    %41 = vector.load %arg6[%c0_15, %c0_16] : memref<32x32xbf16, #tpu.memory_space<vmem>>, vector<32x32xbf16>
    %cst_17 = arith.constant 0.000000e+00 : f32
    %42 = vector.broadcast %cst_17 : f32 to vector<16x32xf32>
    %43 = vector.extract_strided_slice %37 {offsets = [0, 0], sizes = [16, 8], strides = [1, 1]} : vector<16x96xf32> to vector<16x8xf32>
    %44 = vector.shape_cast %43 : vector<16x8xf32> to vector<2x8x8xf32>
    %45 = arith.truncf %44 : vector<2x8x8xf32> to vector<2x8x8xbf16>
    %46 = vector.extract_strided_slice %37 {offsets = [0, 32], sizes = [16, 8], strides = [1, 1]} : vector<16x96xf32> to vector<16x8xf32>
    %47 = vector.shape_cast %46 : vector<16x8xf32> to vector<2x8x8xf32>
    %48 = arith.truncf %47 : vector<2x8x8xf32> to vector<2x8x8xbf16>
    %49 = vector.extract_strided_slice %37 {offsets = [0, 64], sizes = [16, 8], strides = [1, 1]} : vector<16x96xf32> to vector<16x8xf32>
    %50 = vector.shape_cast %49 : vector<16x8xf32> to vector<2x8x8xf32>
    %51 = arith.truncf %50 : vector<2x8x8xf32> to vector<2x8x8xbf16>
    "tpu.trace_start"() <{level = 10 : i32, message = "bqd,bkd->bqk"}> : () -> ()
    %cst_18 = arith.constant dense<0.000000e+00> : vector<2x8x8xf32>
    %52 = tpu.matmul %45, %48, %cst_18 {dimension_numbers = #tpu.dot_dimension_numbers<[2], [2], [1], [1], [0, 0, 0, 1, 1, 1], [0], [0]>} : vector<2x8x8xbf16>, vector<2x8x8xbf16>, vector<2x8x8xf32> -> vector<2x8x8xf32>
    "tpu.trace_stop"() : () -> ()
    %cst_19 = arith.constant 0.353553385 : f32
    %53 = vector.broadcast %cst_19 : f32 to vector<2x8x8xf32>
    %54 = arith.mulf %52, %53 : vector<2x8x8xf32>
    %cst_20 = arith.constant -1.000000e+30 : f32
    %55 = vector.shape_cast %40 : vector<1x8x8xi1> to vector<1x8x8xi1>
    %56 = vector.broadcast %55 : vector<1x8x8xi1> to vector<2x8x8xi1>
    %57 = vector.broadcast %cst_20 : f32 to vector<2x8x8xf32>
    %58 = arith.select %56, %54, %57 : vector<2x8x8xi1>, vector<2x8x8xf32>
    %cst_21 = arith.constant dense<0xFF800000> : vector<2x8xf32>
    %59 = vector.multi_reduction <maximumf>, %58, %cst_21 [2] : vector<2x8x8xf32> to vector<2x8xf32>
    %60 = vector.shape_cast %59 : vector<2x8xf32> to vector<2x8x1xf32>
    %61 = vector.broadcast %60 : vector<2x8x1xf32> to vector<2x8x8xf32>
    %62 = arith.subf %58, %61 : vector<2x8x8xf32>
    %63 = math.exp %62 : vector<2x8x8xf32>
    %cst_22 = arith.constant dense<0.000000e+00> : vector<2x8xf32>
    %64 = vector.multi_reduction <add>, %63, %cst_22 [2] : vector<2x8x8xf32> to vector<2x8xf32>
    %65 = vector.shape_cast %64 : vector<2x8xf32> to vector<2x8x1xf32>
    %66 = tpu.reciprocal %65 {approx = true} : vector<2x8x1xf32> -> vector<2x8x1xf32>
    %67 = vector.broadcast %66 : vector<2x8x1xf32> to vector<2x8x8xf32>
    %68 = arith.mulf %63, %67 : vector<2x8x8xf32>
    %69 = arith.truncf %68 : vector<2x8x8xf32> to vector<2x8x8xbf16>
    "tpu.trace_start"() <{level = 10 : i32, message = "bqk,bkd->bqd"}> : () -> ()
    %cst_23 = arith.constant dense<0.000000e+00> : vector<2x8x8xf32>
    %70 = tpu.matmul %69, %51, %cst_23 {dimension_numbers = #tpu.dot_dimension_numbers<[2], [1], [1], [2], [0, 0, 0, 1, 1, 2], [0], [0]>} : vector<2x8x8xbf16>, vector<2x8x8xbf16>, vector<2x8x8xf32> -> vector<2x8x8xf32>
    "tpu.trace_stop"() : () -> ()
    %71 = vector.shape_cast %70 : vector<2x8x8xf32> to vector<16x8xf32>
    %72 = arith.truncf %71 : vector<16x8xf32> to vector<16x8xbf16>
    %73 = vector.extract_strided_slice %41 {offsets = [0, 0], sizes = [8, 32], strides = [1, 1]} : vector<32x32xbf16> to vector<8x32xbf16>
    %cst_24 = arith.constant dense<0.000000e+00> : vector<16x32xf32>
    %74 = tpu.matmul %72, %73, %cst_24 {dimension_numbers = #tpu.dot_dimension_numbers<[1], [0], [0], [1], [0, 0, 1, 1], [], []>} : vector<16x8xbf16>, vector<8x32xbf16>, vector<16x32xf32> -> vector<16x32xf32>
    %75 = arith.addf %42, %74 : vector<16x32xf32>
    %76 = vector.extract_strided_slice %37 {offsets = [0, 8], sizes = [16, 8], strides = [1, 1]} : vector<16x96xf32> to vector<16x8xf32>
    %77 = vector.shape_cast %76 : vector<16x8xf32> to vector<2x8x8xf32>
    %78 = arith.truncf %77 : vector<2x8x8xf32> to vector<2x8x8xbf16>
    %79 = vector.extract_strided_slice %37 {offsets = [0, 40], sizes = [16, 8], strides = [1, 1]} : vector<16x96xf32> to vector<16x8xf32>
    %80 = vector.shape_cast %79 : vector<16x8xf32> to vector<2x8x8xf32>
    %81 = arith.truncf %80 : vector<2x8x8xf32> to vector<2x8x8xbf16>
    %82 = vector.extract_strided_slice %37 {offsets = [0, 72], sizes = [16, 8], strides = [1, 1]} : vector<16x96xf32> to vector<16x8xf32>
    %83 = vector.shape_cast %82 : vector<16x8xf32> to vector<2x8x8xf32>
    %84 = arith.truncf %83 : vector<2x8x8xf32> to vector<2x8x8xbf16>
    "tpu.trace_start"() <{level = 10 : i32, message = "bqd,bkd->bqk"}> : () -> ()
    %cst_25 = arith.constant dense<0.000000e+00> : vector<2x8x8xf32>
    %85 = tpu.matmul %78, %81, %cst_25 {dimension_numbers = #tpu.dot_dimension_numbers<[2], [2], [1], [1], [0, 0, 0, 1, 1, 1], [0], [0]>} : vector<2x8x8xbf16>, vector<2x8x8xbf16>, vector<2x8x8xf32> -> vector<2x8x8xf32>
    "tpu.trace_stop"() : () -> ()
    %cst_26 = arith.constant 0.353553385 : f32
    %86 = vector.broadcast %cst_26 : f32 to vector<2x8x8xf32>
    %87 = arith.mulf %85, %86 : vector<2x8x8xf32>
    %cst_27 = arith.constant -1.000000e+30 : f32
    %88 = vector.shape_cast %40 : vector<1x8x8xi1> to vector<1x8x8xi1>
    %89 = vector.broadcast %88 : vector<1x8x8xi1> to vector<2x8x8xi1>
    %90 = vector.broadcast %cst_27 : f32 to vector<2x8x8xf32>
    %91 = arith.select %89, %87, %90 : vector<2x8x8xi1>, vector<2x8x8xf32>
    %cst_28 = arith.constant dense<0xFF800000> : vector<2x8xf32>
    %92 = vector.multi_reduction <maximumf>, %91, %cst_28 [2] : vector<2x8x8xf32> to vector<2x8xf32>
    %93 = vector.shape_cast %92 : vector<2x8xf32> to vector<2x8x1xf32>
    %94 = vector.broadcast %93 : vector<2x8x1xf32> to vector<2x8x8xf32>
    %95 = arith.subf %91, %94 : vector<2x8x8xf32>
    %96 = math.exp %95 : vector<2x8x8xf32>
    %cst_29 = arith.constant dense<0.000000e+00> : vector<2x8xf32>
    %97 = vector.multi_reduction <add>, %96, %cst_29 [2] : vector<2x8x8xf32> to vector<2x8xf32>
    %98 = vector.shape_cast %97 : vector<2x8xf32> to vector<2x8x1xf32>
    %99 = tpu.reciprocal %98 {approx = true} : vector<2x8x1xf32> -> vector<2x8x1xf32>
    %100 = vector.broadcast %99 : vector<2x8x1xf32> to vector<2x8x8xf32>
    %101 = arith.mulf %96, %100 : vector<2x8x8xf32>
    %102 = arith.truncf %101 : vector<2x8x8xf32> to vector<2x8x8xbf16>
    "tpu.trace_start"() <{level = 10 : i32, message = "bqk,bkd->bqd"}> : () -> ()
    %cst_30 = arith.constant dense<0.000000e+00> : vector<2x8x8xf32>
    %103 = tpu.matmul %102, %84, %cst_30 {dimension_numbers = #tpu.dot_dimension_numbers<[2], [1], [1], [2], [0, 0, 0, 1, 1, 2], [0], [0]>} : vector<2x8x8xbf16>, vector<2x8x8xbf16>, vector<2x8x8xf32> -> vector<2x8x8xf32>
    "tpu.trace_stop"() : () -> ()
    %104 = vector.shape_cast %103 : vector<2x8x8xf32> to vector<16x8xf32>
    %105 = arith.truncf %104 : vector<16x8xf32> to vector<16x8xbf16>
    %106 = vector.extract_strided_slice %41 {offsets = [8, 0], sizes = [8, 32], strides = [1, 1]} : vector<32x32xbf16> to vector<8x32xbf16>
    %cst_31 = arith.constant dense<0.000000e+00> : vector<16x32xf32>
    %107 = tpu.matmul %105, %106, %cst_31 {dimension_numbers = #tpu.dot_dimension_numbers<[1], [0], [0], [1], [0, 0, 1, 1], [], []>} : vector<16x8xbf16>, vector<8x32xbf16>, vector<16x32xf32> -> vector<16x32xf32>
    %108 = arith.addf %75, %107 : vector<16x32xf32>
    %109 = vector.extract_strided_slice %37 {offsets = [0, 16], sizes = [16, 8], strides = [1, 1]} : vector<16x96xf32> to vector<16x8xf32>
    %110 = vector.shape_cast %109 : vector<16x8xf32> to vector<2x8x8xf32>
    %111 = arith.truncf %110 : vector<2x8x8xf32> to vector<2x8x8xbf16>
    %112 = vector.extract_strided_slice %37 {offsets = [0, 48], sizes = [16, 8], strides = [1, 1]} : vector<16x96xf32> to vector<16x8xf32>
    %113 = vector.shape_cast %112 : vector<16x8xf32> to vector<2x8x8xf32>
    %114 = arith.truncf %113 : vector<2x8x8xf32> to vector<2x8x8xbf16>
    %115 = vector.extract_strided_slice %37 {offsets = [0, 80], sizes = [16, 8], strides = [1, 1]} : vector<16x96xf32> to vector<16x8xf32>
    %116 = vector.shape_cast %115 : vector<16x8xf32> to vector<2x8x8xf32>
    %117 = arith.truncf %116 : vector<2x8x8xf32> to vector<2x8x8xbf16>
    "tpu.trace_start"() <{level = 10 : i32, message = "bqd,bkd->bqk"}> : () -> ()
    %cst_32 = arith.constant dense<0.000000e+00> : vector<2x8x8xf32>
    %118 = tpu.matmul %111, %114, %cst_32 {dimension_numbers = #tpu.dot_dimension_numbers<[2], [2], [1], [1], [0, 0, 0, 1, 1, 1], [0], [0]>} : vector<2x8x8xbf16>, vector<2x8x8xbf16>, vector<2x8x8xf32> -> vector<2x8x8xf32>
    "tpu.trace_stop"() : () -> ()
    %cst_33 = arith.constant 0.353553385 : f32
    %119 = vector.broadcast %cst_33 : f32 to vector<2x8x8xf32>
    %120 = arith.mulf %118, %119 : vector<2x8x8xf32>
    %cst_34 = arith.constant -1.000000e+30 : f32
    %121 = vector.shape_cast %40 : vector<1x8x8xi1> to vector<1x8x8xi1>
    %122 = vector.broadcast %121 : vector<1x8x8xi1> to vector<2x8x8xi1>
    %123 = vector.broadcast %cst_34 : f32 to vector<2x8x8xf32>
    %124 = arith.select %122, %120, %123 : vector<2x8x8xi1>, vector<2x8x8xf32>
    %cst_35 = arith.constant dense<0xFF800000> : vector<2x8xf32>
    %125 = vector.multi_reduction <maximumf>, %124, %cst_35 [2] : vector<2x8x8xf32> to vector<2x8xf32>
    %126 = vector.shape_cast %125 : vector<2x8xf32> to vector<2x8x1xf32>
    %127 = vector.broadcast %126 : vector<2x8x1xf32> to vector<2x8x8xf32>
    %128 = arith.subf %124, %127 : vector<2x8x8xf32>
    %129 = math.exp %128 : vector<2x8x8xf32>
    %cst_36 = arith.constant dense<0.000000e+00> : vector<2x8xf32>
    %130 = vector.multi_reduction <add>, %129, %cst_36 [2] : vector<2x8x8xf32> to vector<2x8xf32>
    %131 = vector.shape_cast %130 : vector<2x8xf32> to vector<2x8x1xf32>
    %132 = tpu.reciprocal %131 {approx = true} : vector<2x8x1xf32> -> vector<2x8x1xf32>
    %133 = vector.broadcast %132 : vector<2x8x1xf32> to vector<2x8x8xf32>
    %134 = arith.mulf %129, %133 : vector<2x8x8xf32>
    %135 = arith.truncf %134 : vector<2x8x8xf32> to vector<2x8x8xbf16>
    "tpu.trace_start"() <{level = 10 : i32, message = "bqk,bkd->bqd"}> : () -> ()
    %cst_37 = arith.constant dense<0.000000e+00> : vector<2x8x8xf32>
    %136 = tpu.matmul %135, %117, %cst_37 {dimension_numbers = #tpu.dot_dimension_numbers<[2], [1], [1], [2], [0, 0, 0, 1, 1, 2], [0], [0]>} : vector<2x8x8xbf16>, vector<2x8x8xbf16>, vector<2x8x8xf32> -> vector<2x8x8xf32>
    "tpu.trace_stop"() : () -> ()
    %137 = vector.shape_cast %136 : vector<2x8x8xf32> to vector<16x8xf32>
    %138 = arith.truncf %137 : vector<16x8xf32> to vector<16x8xbf16>
    %139 = vector.extract_strided_slice %41 {offsets = [16, 0], sizes = [8, 32], strides = [1, 1]} : vector<32x32xbf16> to vector<8x32xbf16>
    %cst_38 = arith.constant dense<0.000000e+00> : vector<16x32xf32>
    %140 = tpu.matmul %138, %139, %cst_38 {dimension_numbers = #tpu.dot_dimension_numbers<[1], [0], [0], [1], [0, 0, 1, 1], [], []>} : vector<16x8xbf16>, vector<8x32xbf16>, vector<16x32xf32> -> vector<16x32xf32>
    %141 = arith.addf %108, %140 : vector<16x32xf32>
    %142 = vector.extract_strided_slice %37 {offsets = [0, 24], sizes = [16, 8], strides = [1, 1]} : vector<16x96xf32> to vector<16x8xf32>
    %143 = vector.shape_cast %142 : vector<16x8xf32> to vector<2x8x8xf32>
    %144 = arith.truncf %143 : vector<2x8x8xf32> to vector<2x8x8xbf16>
    %145 = vector.extract_strided_slice %37 {offsets = [0, 56], sizes = [16, 8], strides = [1, 1]} : vector<16x96xf32> to vector<16x8xf32>
    %146 = vector.shape_cast %145 : vector<16x8xf32> to vector<2x8x8xf32>
    %147 = arith.truncf %146 : vector<2x8x8xf32> to vector<2x8x8xbf16>
    %148 = vector.extract_strided_slice %37 {offsets = [0, 88], sizes = [16, 8], strides = [1, 1]} : vector<16x96xf32> to vector<16x8xf32>
    %149 = vector.shape_cast %148 : vector<16x8xf32> to vector<2x8x8xf32>
    %150 = arith.truncf %149 : vector<2x8x8xf32> to vector<2x8x8xbf16>
    "tpu.trace_start"() <{level = 10 : i32, message = "bqd,bkd->bqk"}> : () -> ()
    %cst_39 = arith.constant dense<0.000000e+00> : vector<2x8x8xf32>
    %151 = tpu.matmul %144, %147, %cst_39 {dimension_numbers = #tpu.dot_dimension_numbers<[2], [2], [1], [1], [0, 0, 0, 1, 1, 1], [0], [0]>} : vector<2x8x8xbf16>, vector<2x8x8xbf16>, vector<2x8x8xf32> -> vector<2x8x8xf32>
    "tpu.trace_stop"() : () -> ()
    %cst_40 = arith.constant 0.353553385 : f32
    %152 = vector.broadcast %cst_40 : f32 to vector<2x8x8xf32>
    %153 = arith.mulf %151, %152 : vector<2x8x8xf32>
    %cst_41 = arith.constant -1.000000e+30 : f32
    %154 = vector.shape_cast %40 : vector<1x8x8xi1> to vector<1x8x8xi1>
    %155 = vector.broadcast %154 : vector<1x8x8xi1> to vector<2x8x8xi1>
    %156 = vector.broadcast %cst_41 : f32 to vector<2x8x8xf32>
    %157 = arith.select %155, %153, %156 : vector<2x8x8xi1>, vector<2x8x8xf32>
    %cst_42 = arith.constant dense<0xFF800000> : vector<2x8xf32>
    %158 = vector.multi_reduction <maximumf>, %157, %cst_42 [2] : vector<2x8x8xf32> to vector<2x8xf32>
    %159 = vector.shape_cast %158 : vector<2x8xf32> to vector<2x8x1xf32>
    %160 = vector.broadcast %159 : vector<2x8x1xf32> to vector<2x8x8xf32>
    %161 = arith.subf %157, %160 : vector<2x8x8xf32>
    %162 = math.exp %161 : vector<2x8x8xf32>
    %cst_43 = arith.constant dense<0.000000e+00> : vector<2x8xf32>
    %163 = vector.multi_reduction <add>, %162, %cst_43 [2] : vector<2x8x8xf32> to vector<2x8xf32>
    %164 = vector.shape_cast %163 : vector<2x8xf32> to vector<2x8x1xf32>
    %165 = tpu.reciprocal %164 {approx = true} : vector<2x8x1xf32> -> vector<2x8x1xf32>
    %166 = vector.broadcast %165 : vector<2x8x1xf32> to vector<2x8x8xf32>
    %167 = arith.mulf %162, %166 : vector<2x8x8xf32>
    %168 = arith.truncf %167 : vector<2x8x8xf32> to vector<2x8x8xbf16>
    "tpu.trace_start"() <{level = 10 : i32, message = "bqk,bkd->bqd"}> : () -> ()
    %cst_44 = arith.constant dense<0.000000e+00> : vector<2x8x8xf32>
    %169 = tpu.matmul %168, %150, %cst_44 {dimension_numbers = #tpu.dot_dimension_numbers<[2], [1], [1], [2], [0, 0, 0, 1, 1, 2], [0], [0]>} : vector<2x8x8xbf16>, vector<2x8x8xbf16>, vector<2x8x8xf32> -> vector<2x8x8xf32>
    "tpu.trace_stop"() : () -> ()
    %170 = vector.shape_cast %169 : vector<2x8x8xf32> to vector<16x8xf32>
    %171 = arith.truncf %170 : vector<16x8xf32> to vector<16x8xbf16>
    %172 = vector.extract_strided_slice %41 {offsets = [24, 0], sizes = [8, 32], strides = [1, 1]} : vector<32x32xbf16> to vector<8x32xbf16>
    %cst_45 = arith.constant dense<0.000000e+00> : vector<16x32xf32>
    %173 = tpu.matmul %171, %172, %cst_45 {dimension_numbers = #tpu.dot_dimension_numbers<[1], [0], [0], [1], [0, 0, 1, 1], [], []>} : vector<16x8xbf16>, vector<8x32xbf16>, vector<16x32xf32> -> vector<16x32xf32>
    %174 = arith.addf %141, %173 : vector<16x32xf32>
    %175 = arith.addf %1, %174 : vector<16x32xf32>
    %c0_46 = arith.constant 0 : index
    %c0_47 = arith.constant 0 : index
    %176 = vector.load %arg7[%c0_46, %c0_47] : memref<1x32xf32, #tpu.memory_space<vmem>>, vector<1x32xf32>
    %177 = vector.shape_cast %176 : vector<1x32xf32> to vector<32xf32>
    %178 = vector.shape_cast %177 : vector<32xf32> to vector<1x32xf32>
    %179 = vector.broadcast %178 : vector<1x32xf32> to vector<16x32xf32>
    %180 = arith.addf %175, %179 : vector<16x32xf32>
    %c0_48 = arith.constant 0 : index
    %c0_49 = arith.constant 0 : index
    %181 = vector.load %arg8[%c0_48, %c0_49] : memref<1x32xf32, #tpu.memory_space<vmem>>, vector<1x32xf32>
    %182 = vector.shape_cast %181 : vector<1x32xf32> to vector<32xf32>
    %c0_50 = arith.constant 0 : index
    %c0_51 = arith.constant 0 : index
    %183 = vector.load %arg9[%c0_50, %c0_51] : memref<1x32xf32, #tpu.memory_space<vmem>>, vector<1x32xf32>
    %184 = vector.shape_cast %183 : vector<1x32xf32> to vector<32xf32>
    %cst_52 = arith.constant dense<0.000000e+00> : vector<16xf32>
    %185 = vector.multi_reduction <add>, %180, %cst_52 [1] : vector<16x32xf32> to vector<16xf32>
    %186 = vector.shape_cast %185 : vector<16xf32> to vector<16x1xf32>
    %cst_53 = arith.constant 3.200000e+01 : f32
    %187 = vector.broadcast %cst_53 : f32 to vector<16x1xf32>
    %188 = arith.divf %186, %187 : vector<16x1xf32>
    %189 = vector.broadcast %188 : vector<16x1xf32> to vector<16x32xf32>
    %190 = arith.subf %180, %189 : vector<16x32xf32>
    %191 = arith.mulf %190, %190 : vector<16x32xf32>
    %cst_54 = arith.constant dense<0.000000e+00> : vector<16xf32>
    %192 = vector.multi_reduction <add>, %191, %cst_54 [1] : vector<16x32xf32> to vector<16xf32>
    %193 = vector.shape_cast %192 : vector<16xf32> to vector<16x1xf32>
    %cst_55 = arith.constant 3.200000e+01 : f32
    %194 = vector.broadcast %cst_55 : f32 to vector<16x1xf32>
    %195 = arith.divf %193, %194 : vector<16x1xf32>
    %196 = vector.broadcast %188 : vector<16x1xf32> to vector<16x32xf32>
    %197 = arith.subf %180, %196 : vector<16x32xf32>
    %cst_56 = arith.constant 9.99999974E-6 : f32
    %198 = vector.broadcast %cst_56 : f32 to vector<16x1xf32>
    %199 = arith.addf %195, %198 : vector<16x1xf32>
    %200 = math.rsqrt %199 : vector<16x1xf32>
    %201 = vector.broadcast %200 : vector<16x1xf32> to vector<16x32xf32>
    %202 = arith.mulf %197, %201 : vector<16x32xf32>
    %203 = vector.shape_cast %182 : vector<32xf32> to vector<1x32xf32>
    %204 = vector.broadcast %203 : vector<1x32xf32> to vector<16x32xf32>
    %205 = arith.mulf %202, %204 : vector<16x32xf32>
    %206 = vector.shape_cast %184 : vector<32xf32> to vector<1x32xf32>
    %207 = vector.broadcast %206 : vector<1x32xf32> to vector<16x32xf32>
    %208 = arith.addf %205, %207 : vector<16x32xf32>
    %209 = arith.truncf %208 : vector<16x32xf32> to vector<16x32xbf16>
    %c0_57 = arith.constant 0 : index
    %c0_58 = arith.constant 0 : index
    %210 = vector.load %arg10[%c0_57, %c0_58] : memref<32x128xbf16, #tpu.memory_space<vmem>>, vector<32x128xbf16>
    %cst_59 = arith.constant dense<0.000000e+00> : vector<16x128xf32>
    %211 = tpu.matmul %209, %210, %cst_59 {dimension_numbers = #tpu.dot_dimension_numbers<[1], [0], [0], [1], [0, 0, 1, 1], [], []>} : vector<16x32xbf16>, vector<32x128xbf16>, vector<16x128xf32> -> vector<16x128xf32>
    %c0_60 = arith.constant 0 : index
    %c0_61 = arith.constant 0 : index
    %212 = vector.load %arg11[%c0_60, %c0_61] : memref<1x128xf32, #tpu.memory_space<vmem>>, vector<1x128xf32>
    %213 = vector.shape_cast %212 : vector<1x128xf32> to vector<128xf32>
    %214 = vector.shape_cast %213 : vector<128xf32> to vector<1x128xf32>
    %215 = vector.broadcast %214 : vector<1x128xf32> to vector<16x128xf32>
    %216 = arith.addf %211, %215 : vector<16x128xf32>
    %cst_62 = arith.constant 5.000000e-01 : f32
    %217 = vector.broadcast %cst_62 : f32 to vector<16x128xf32>
    %218 = arith.mulf %217, %216 : vector<16x128xf32>
    %cst_63 = arith.constant 4.471500e-02 : f32
    %219 = vector.broadcast %cst_63 : f32 to vector<16x128xf32>
    %220 = arith.mulf %219, %216 : vector<16x128xf32>
    %221 = arith.mulf %220, %216 : vector<16x128xf32>
    %222 = arith.mulf %221, %216 : vector<16x128xf32>
    %223 = arith.addf %216, %222 : vector<16x128xf32>
    %cst_64 = arith.constant 0.797884583 : f32
    %224 = vector.broadcast %cst_64 : f32 to vector<16x128xf32>
    %225 = arith.mulf %224, %223 : vector<16x128xf32>
    %226 = math.tanh %225 : vector<16x128xf32>
    %cst_65 = arith.constant 1.000000e+00 : f32
    %227 = vector.broadcast %cst_65 : f32 to vector<16x128xf32>
    %228 = arith.addf %227, %226 : vector<16x128xf32>
    %229 = arith.mulf %218, %228 : vector<16x128xf32>
    %230 = arith.truncf %229 : vector<16x128xf32> to vector<16x128xbf16>
    %c0_66 = arith.constant 0 : index
    %c0_67 = arith.constant 0 : index
    %231 = vector.load %arg12[%c0_66, %c0_67] : memref<128x32xbf16, #tpu.memory_space<vmem>>, vector<128x32xbf16>
    %cst_68 = arith.constant dense<0.000000e+00> : vector<16x32xf32>
    %232 = tpu.matmul %230, %231, %cst_68 {dimension_numbers = #tpu.dot_dimension_numbers<[1], [0], [0], [1], [0, 0, 1, 1], [], []>} : vector<16x128xbf16>, vector<128x32xbf16>, vector<16x32xf32> -> vector<16x32xf32>
    %c0_69 = arith.constant 0 : index
    %c0_70 = arith.constant 0 : index
    %233 = vector.load %arg13[%c0_69, %c0_70] : memref<1x32xf32, #tpu.memory_space<vmem>>, vector<1x32xf32>
    %234 = vector.shape_cast %233 : vector<1x32xf32> to vector<32xf32>
    %235 = vector.shape_cast %234 : vector<32xf32> to vector<1x32xf32>
    %236 = vector.broadcast %235 : vector<1x32xf32> to vector<16x32xf32>
    %237 = arith.addf %232, %236 : vector<16x32xf32>
    %238 = arith.addf %180, %237 : vector<16x32xf32>
    %239 = vector.shape_cast %238 : vector<16x32xf32> to vector<2x8x32xf32>
    %c0_71 = arith.constant 0 : index
    %c0_72 = arith.constant 0 : index
    %c0_73 = arith.constant 0 : index
    %240 = vector.load %arg14[%c0_71, %c0_72, %c0_73] : memref<2x8x32xf32, #tpu.memory_space<vmem>>, vector<2x8x32xf32>
    tpu.vector_store %arg14[%c0_71, %c0_72, %c0_73], %239 {strides = array<i32>} : memref<2x8x32xf32, #tpu.memory_space<vmem>>, vector<2x8x32xf32>,
    return
  }
  func.func @transform_0(%arg0: i32) -> (i32, i32, i32) {
    %c0_i32 = arith.constant 0 : i32
    %c0_i32_0 = arith.constant 0 : i32
    %c0_i32_1 = arith.constant 0 : i32
    return %arg0, %c0_i32, %c0_i32_0 : i32, i32, i32
  }
  func.func @transform_1(%arg0: i32) -> (i32, i32) {
    %c0_i32 = arith.constant 0 : i32
    %c0_i32_0 = arith.constant 0 : i32
    %c0_i32_1 = arith.constant 0 : i32
    return %c0_i32, %c0_i32_0 : i32, i32
  }
  func.func @transform_2(%arg0: i32) -> (i32, i32) {
    %c0_i32 = arith.constant 0 : i32
    %c0_i32_0 = arith.constant 0 : i32
    %c0_i32_1 = arith.constant 0 : i32
    return %c0_i32, %c0_i32_0 : i32, i32
  }
  func.func @transform_3(%arg0: i32) -> (i32, i32) {
    %c0_i32 = arith.constant 0 : i32
    %c0_i32_0 = arith.constant 0 : i32
    %c0_i32_1 = arith.constant 0 : i32
    return %c0_i32, %c0_i32_0 : i32, i32
  }
  func.func @transform_4(%arg0: i32) -> (i32, i32) {
    %c0_i32 = arith.constant 0 : i32
    %c0_i32_0 = arith.constant 0 : i32
    %c0_i32_1 = arith.constant 0 : i32
    return %c0_i32, %c0_i32_0 : i32, i32
  }
  func.func @transform_5(%arg0: i32) -> (i32, i32) {
    %c0_i32 = arith.constant 0 : i32
    %c0_i32_0 = arith.constant 0 : i32
    %c0_i32_1 = arith.constant 0 : i32
    return %c0_i32, %c0_i32_0 : i32, i32
  }
  func.func @transform_6(%arg0: i32) -> (i32, i32) {
    %c0_i32 = arith.constant 0 : i32
    %c0_i32_0 = arith.constant 0 : i32
    %c0_i32_1 = arith.constant 0 : i32
    return %c0_i32, %c0_i32_0 : i32, i32
  }
  func.func @transform_7(%arg0: i32) -> (i32, i32) {
    %c0_i32 = arith.constant 0 : i32
    %c0_i32_0 = arith.constant 0 : i32
    %c0_i32_1 = arith.constant 0 : i32
    return %c0_i32, %c0_i32_0 : i32, i32
  }
  func.func @transform_8(%arg0: i32) -> (i32, i32) {
    %c0_i32 = arith.constant 0 : i32
    %c0_i32_0 = arith.constant 0 : i32
    %c0_i32_1 = arith.constant 0 : i32
    return %c0_i32, %c0_i32_0 : i32, i32
  }
  func.func @transform_9(%arg0: i32) -> (i32, i32) {
    %c0_i32 = arith.constant 0 : i32
    %c0_i32_0 = arith.constant 0 : i32
    %c0_i32_1 = arith.constant 0 : i32
    return %c0_i32, %c0_i32_0 : i32, i32
  }
  func.func @transform_10(%arg0: i32) -> (i32, i32) {
    %c0_i32 = arith.constant 0 : i32
    %c0_i32_0 = arith.constant 0 : i32
    %c0_i32_1 = arith.constant 0 : i32
    return %c0_i32, %c0_i32_0 : i32, i32
  }
  func.func @transform_11(%arg0: i32) -> (i32, i32) {
    %c0_i32 = arith.constant 0 : i32
    %c0_i32_0 = arith.constant 0 : i32
    %c0_i32_1 = arith.constant 0 : i32
    return %c0_i32, %c0_i32_0 : i32, i32
  }
  func.func @transform_12(%arg0: i32) -> (i32, i32) {
    %c0_i32 = arith.constant 0 : i32
    %c0_i32_0 = arith.constant 0 : i32
    %c0_i32_1 = arith.constant 0 : i32
    return %c0_i32, %c0_i32_0 : i32, i32
  }
  func.func @transform_13(%arg0: i32) -> (i32, i32, i32) {
    %c0_i32 = arith.constant 0 : i32
    %c0_i32_0 = arith.constant 0 : i32
    %c0_i32_1 = arith.constant 0 : i32
    return %arg0, %c0_i32, %c0_i32_0 : i32, i32, i32
  }
}

</mosaic_0001>

<bundles_post_ra>
// kernel: tpu_custom_call.1
= control target key start
LH: loop header
LB: loop body
LE: loop exit
PB: predicated region body
PF: predicated region fallthrough
CT: control target
= control target key end

     0   :  { %vm50_vm0 = vcmask 261120   ;;  %s2297_s0 = inlined_call_operand.vmem [shape: f32[2,8,32], index: 0, kind: input, shape index: {}]   ;;  %s2298_s1 = inlined_call_operand.vmem [shape: f32[1,32], index: 1, kind: input, shape index: {}]   ;;  %s2299_s2 = inlined_call_operand.vmem [shape: f32[1,32], index: 2, kind: input, shape index: {}]   ;;  %s2300_s3 = inlined_call_operand.vmem [shape: bf16[32,96], index: 3, kind: input, shape index: {}]   ;;  %s2301_s4 = inlined_call_operand.vmem [shape: f32[1,96], index: 4, kind: input, shape index: {}]   ;;  %s2302_s5 = inlined_call_operand.vmem [shape: bf16[32,32], index: 5, kind: input, shape index: {}]   ;;  %s2303_s6 = inlined_call_operand.vmem [shape: f32[1,32], index: 6, kind: input, shape index: {}]   ;;  %s2304_s7 = inlined_call_operand.vmem [shape: f32[1,32], index: 7, kind: input, shape index: {}]   ;;  %s2305_s8 = inlined_call_operand.vmem [shape: f32[1,32], index: 8, kind: input, shape index: {}]   ;;  %s2306_s9 = inlined_call_operand.vmem [shape: bf16[32,128], index: 9, kind: input, shape index: {}]   ;;  %s2307_s10 = inlined_call_operand.vmem [shape: f32[1,128], index: 10, kind: input, shape index: {}]   ;;  %s2308_s11 = inlined_call_operand.vmem [shape: bf16[128,32], index: 11, kind: input, shape index: {}]   ;;  %s2309_s12 = inlined_call_operand.vmem [shape: f32[1,32], index: 12, kind: input, shape index: {}]   ;;  %s2310_s13 = inlined_call_operand.hbm [shape: f32[2,8,32], index: 13, kind: output, shape index: {}]  }
   0x1   :  { %v1977_v0 = vld [vmem:[%s2297_s0] sm:$0xff]  ;;  %v1982_v1 = vld [vmem:[%s2297_s0 + $0x8] sm:$0xff] }
   0x2   :  { %v51_v2 = vsel %vm50_vm0, %v1977_v0, 0.0  ;;  %v54_v3 = vsel %vm50_vm0, %v1982_v1, 0.0 }
   0x3   :  { %52 = vadd.xlane.f32.xlu0 %v51_v2 }
   0x7   :  { %55 = vadd.xlane.f32.xlu0 %v54_v3 }
   0x8   :  { %18 = vsyncpa [#allocation3], 0  ;;  %v1810_v14 = vld [vmem:[%s2300_s3 + $0x8] sm:$0xff]   ;;  %v1888_v15 = vmov 0.0   ;;  %vm1889_vm1 = vmmov 0   ;;  %v1811_v16 = vld [vmem:[%s2300_s3] sm:$0xff]   ;;  %v162_v47 = vlaneseq }
   0x9   :  { %1638 = vmatprep.subr.bf16.mxu1 %v1888_v15  ;;  %1642 = vmatprep.mubr.msk.bf16.mxu1 %vm1889_vm1, %v1888_v15  ;;  %v1541_v25 = vld [vmem:[%s2298_s1] ss:$0 sm:$0xff]  ;;  %s1890_s1 = smov 96   ;;  %vm176_vm2 = vcmask 64512   ;;  %vm307_vm4 = vcmask 1043456   ;;  %s1893_s20 = smov 120  }
   0xa   :  { %1639 = vmatpush3.bf16.msra.mxu1 %v1810_v14  ;;  %1664 = vmatprep.subr.bf16.mxu0 %v1888_v15  ;;  %v1542_v29 = vld [vmem:[%s2299_s2] ss:$0 sm:$0xff]  ;;  %v163_v48 = vshrl.u32 %v162_v47, 7  ;;  %v165_v49 = vand.u32 127, %v162_v47  ;;  %s1891_s2 = smov 64   ;;  %s1894_s21 = smov 56  }
   0xb   :  { %1640 = vmatprep.subr.bf16.mxu1 %v1888_v15  ;;  %1666 = vmatprep.mubr.msk.bf16.mxu0 %vm1889_vm1, %v1888_v15  ;;  %v1543_v34 = vld [vmem:[%s2301_s4] ss:$0 sm:$0xff]  ;;  %s1892_s4 = smov 88   ;;  %s1895_s22 = smov 80  }
   0xc   :  { %vm2036_vm3 = vcmp.ge.s32.totalorder %v163_v48, %v165_v49  ;;  %s1896_s23 = smov 112   ;;  %s1897_s28 = smov 48  }
   0xd   :  { %s1898_s0 = smov 72   ;;  %s1899_s29 = smov 104  }
   0xe   :  { %1641 = vmatpush3.bf16.msra.mxu1 %v1811_v16  ;;  %s1900_s3 = smov 40   ;;  %s1901_s17 = smov [#allocation2]  }
   0xf   :  { %1646 = vmatprep.subr.bf16.mxu1 %v1888_v15 }
  0x8c   :  { %v53_v4 = vpop.xlane.xlu0 %52 }
  0x8d   :  { %v58_v5 = vmul.f32 0.03125, %v53_v4 }
  0x8f   :  { %v60_v6 = vsub.f32 %v1977_v0, %v58_v5 }
  0x90   :  { %v56_v7 = vpop.xlane.xlu0 %55 }
  0x91   :  { %v59_v8 = vmul.f32 0.03125, %v56_v7  ;;  %v62_v9 = vmul.f32 %v60_v6, %v60_v6 }
  0x93   :  { %v61_v10 = vsub.f32 %v1982_v1, %v59_v8  ;;  %v64_v11 = vsel %vm50_vm0, %v62_v9, 0.0 }
  0x94   :  { %65 = vadd.xlane.f32.xlu1 %v64_v11 }
  0x95   :  { %v63_v12 = vmul.f32 %v61_v10, %v61_v10 }
  0x97   :  { %v67_v13 = vsel %vm50_vm0, %v63_v12, 0.0 }
  0x98   :  { %68 = vadd.xlane.f32.xlu1 %v67_v13 }
 0x11d   :  { %v66_v17 = vpop.xlane.xlu1 %65 }
 0x11e   :  { %v70_v18 = vmul.f32 0.03125, %v66_v17 }
 0x120   :  { %v72_v19 = vadd.f32 1e-05, %v70_v18 }
 0x121   :  { %v69_v20 = vpop.xlane.xlu1 %68 }
 0x122   :  { %1822 = vrsqrt.f32 %v72_v19  ;;  %v71_v21 = vmul.f32 0.03125, %v69_v20 }
 0x124   :  { %v73_v22 = vadd.f32 1e-05, %v71_v21 }
 0x126   :  { %1824 = vrsqrt.f32 %v73_v22 }
 0x12f   :  { %v1823_v23 = vpop.eup %1822 }
 0x130   :  { %v76_v24 = vmul.f32 %v1823_v23, %v60_v6 }
 0x132   :  { %v84_v28 = vmul.f32 %v1541_v25, %v76_v24 }
 0x133   :  { %v1825_v26 = vpop.eup %1824 }
 0x134   :  { %v77_v27 = vmul.f32 %v1825_v26, %v61_v10  ;;  %v92_v31 = vadd.f32 %v1542_v29, %v84_v28 }
 0x136   :  { %v85_v30 = vmul.f32 %v1541_v25, %v77_v27 }
 0x138   :  { %v93_v32 = vadd.f32 %v1542_v29, %v85_v30 }
 0x13a   :  { %v94_v33 = vpack.c.bf16 %v93_v32, %v92_v31 }
 0x13c   :  { %1643 = vmatmul.mubr.msk.bf16.vlgmr.msra.gmra.mxu1 %vm50_vm0, %v94_v33 }
 0x13d   :  { %1648 = vmatprep.mubr.msk.bf16.mxu1 %vm1889_vm1, %v1888_v15 }
 0x1fc   :  { %v155_v35 = vpop.f32.mrf.mxu1 }
 0x1fd   :  { %v156_v36 = vadd.f32 %v1543_v34, %v155_v35 }
 0x1fe   :  { %v1644_v37 = vpop.f32.mrf.mxu1 }
 0x1ff   :  { %v2018_v38 = vpack.c.bf16 %v156_v36, %v156_v36 }
 0x200   :  { %v158_v39 = vpop.f32.mrf.mxu1 }
 0x201   :  { %v159_v40 = vadd.f32 %v1543_v34, %v158_v39  ;;  %174 = vrot.lane.b32.xlu0 %v2018_v38, %s1890_s1 }
 0x202   :  { %v1645_v41 = vpop.f32.mrf.mxu1 }
 0x203   :  { %v2021_v42 = vpack.c.bf16 %v159_v40, %v159_v40 }
 0x205   :  { %224 = vrot.lane.b32.xlu1 %v2021_v42, %s1890_s1 }
 0x273   :  { %v175_v43 = vpop.permute.xlu0 %174 }
 0x274   :  { %v181_v44 = vsel %vm176_vm2, %v175_v43, 0 }
 0x275   :  { %1647 = vmatpush3.bf16.xpose.msra.mxu1 %v181_v44 }
 0x276   :  { %1652 = vmatprep.subr.bf16.mxu1 %v1888_v15 }
 0x277   :  { %v225_v45 = vpop.permute.xlu1 %224 }
 0x278   :  { %v230_v46 = vsel %vm176_vm2, %v225_v45, 0 }
 0x27c   :  { %1649 = vmatmul.mubr.msk.bf16.vlgmr.msra.gmra.mxu1 %vm176_vm2, %v2018_v38 }
 0x27d   :  { %1653 = vmatpush3.bf16.xpose.msra.mxu1 %v230_v46  ;;  %1654 = vmatprep.mubr.msk.bf16.mxu1 %vm1889_vm1, %v1888_v15 }
 0x27e   :  { %1658 = vmatprep.subr.bf16.mxu1 %v1888_v15 }
 0x284   :  { %1655 = vmatmul.mubr.msk.bf16.vlgmr.msra.gmra.mxu1 %vm176_vm2, %v2021_v42 }
 0x285   :  { %1660 = vmatprep.mubr.msk.bf16.mxu1 %vm1889_vm1, %v1888_v15 }
 0x33c   :  { %v217_v50 = vpop.f32.mrf.mxu1 }
 0x33d   :  { %v272_v52 = vmul.f32 0.35355338, %v217_v50 }
 0x33e   :  { %v1650_v53 = vpop.f32.mrf.mxu1 }
 0x33f   :  { %v276_v54 = vsel %vm2036_vm3, %v272_v52, -1e+30 }
 0x340   :  { %v220_v55 = vpop.f32.mrf.mxu1  ;;  %v278_v56 = vsel %vm176_vm2, %v276_v54, -inf }
 0x341   :  { %279 = vmax.xlane.f32.xlu1 %v278_v56 }
 0x342   :  { %v1651_v57 = vpop.f32.mrf.mxu1 }
 0x344   :  { %v266_v58 = vpop.f32.mrf.mxu1 }
 0x345   :  { %v273_v59 = vmul.f32 0.35355338, %v266_v58 }
 0x346   :  { %v1656_v60 = vpop.f32.mrf.mxu1 }
 0x347   :  { %v277_v61 = vsel %vm2036_vm3, %v273_v59, -1e+30 }
 0x348   :  { %v269_v62 = vpop.f32.mrf.mxu1  ;;  %v281_v63 = vsel %vm176_vm2, %v277_v61, -inf }
 0x349   :  { %282 = vmax.xlane.f32.xlu0 %v281_v63 }
 0x34a   :  { %v1657_v2 = vpop.f32.mrf.mxu1 }
 0x352   :  { %351 = vrot.lane.b32.xlu1 %v2021_v42, %s1891_s2 }
 0x356   :  { %402 = vrot.lane.b32.xlu1 %v2018_v38, %s1892_s4 }
 0x3ca   :  { %v280_v3 = vpop.xlane.xlu1 %279 }
 0x3cb   :  { %v284_v4 = vsub.f32 %v276_v54, %v280_v3 }
 0x3cd   :  { %v286_v5 = vmul.f32 1.442695, %v284_v4 }
 0x3ce   :  { %v352_v6 = vpop.permute.xlu1 %351 }
 0x3cf   :  { %1826 = vpow2.f32 %v286_v5  ;;  %v357_v7 = vsel %vm307_vm4, %v352_v6, 0 }
 0x3d0   :  { %1665 = vmatpush3.bf16.msra.mxu0 %v357_v7 }
 0x3d1   :  { %1676 = vmatprep.subr.bf16.mxu0 %v1888_v15 }
 0x3d2   :  { %v283_v8 = vpop.xlane.xlu0 %282  ;;  %v403_v17 = vpop.permute.xlu1 %402 }
 0x3d3   :  { %v285_v9 = vsub.f32 %v277_v61, %v283_v8  ;;  %v408_v24 = vsel %vm176_vm2, %v403_v17, 0  ;;  %v167_v17 = vld [vmem:[%s2302_s5] sm:$0xf] }
 0x3d5   :  { %v288_v10 = vmul.f32 1.442695, %v285_v9 }
 0x3d7   :  { %1828 = vpow2.f32 %v288_v10 }
 0x3dc   :  { %v1827_v11 = vpop.eup %1826 }
 0x3dd   :  { %v290_v12 = vsel %vm176_vm2, %v1827_v11, 0.0 }
 0x3de   :  { %291 = vadd.xlane.f32.xlu0 %v290_v12 }
 0x3e4   :  { %v1829_v13 = vpop.eup %1828 }
 0x3e5   :  { %v293_v14 = vsel %vm176_vm2, %v1829_v13, 0.0 }
 0x3e6   :  { %294 = vadd.xlane.f32.xlu1 %v293_v14 }
 0x3f4   :  { %302 = vrot.lane.b32.xlu0 %v2018_v38, %s1891_s2 }
 0x3f7   :  { %452 = vrot.lane.b32.xlu1 %v2021_v42, %s1892_s4 }
 0x3f8   :  { %400 = vrot.lane.b32.xlu0 %v2018_v38, %s1893_s20 }
 0x3fb   :  { %450 = vrot.lane.b32.xlu1 %v2021_v42, %s1893_s20 }
 0x467   :  { %v292_v16 = vpop.xlane.xlu0 %291 }
 0x468   :  { %1830 = vrcp.f32 %v292_v16 }
 0x46b   :  { %v303_v18 = vpop.permute.xlu0 %302 }
 0x46c   :  { %v309_v19 = vsel %vm307_vm4, %v303_v18, 0 }
 0x46d   :  { %1659 = vmatpush3.bf16.msra.mxu1 %v309_v19 }
 0x46e   :  { %1670 = vmatprep.subr.bf16.mxu1 %v1888_v15 }
 0x46f   :  { %v295_v20 = vpop.xlane.xlu1 %294  ;;  %v401_v29 = vpop.permute.xlu0 %400 }
 0x470   :  { %1832 = vrcp.f32 %v295_v20  ;;  %v676_v20 = vsel %vm307_vm4, %v167_v17, 0 }
 0x473   :  { %v453_v27 = vpop.permute.xlu1 %452 }
 0x474   :  { %v458_v30 = vsel %vm176_vm2, %v453_v27, 0 }
 0x475   :  { %v1831_v21 = vpop.eup %1830 }
 0x476   :  { %v298_v22 = vmul.f32 %v1831_v21, %v1827_v11 }
 0x477   :  { %v451_v31 = vpop.permute.xlu1 %450 }
 0x478   :  { %v300_v23 = vpack.c.bf16 %v298_v22, %v298_v22 }
 0x47a   :  { %1661 = vmatmul.mubr.msk.bf16.vlgmr.msra.gmra.mxu1 %vm176_vm2, %v300_v23 }
 0x47b   :  { %1671 = vmatpush3.bf16.xpose.msra.mxu1 %v408_v24  ;;  %1672 = vmatprep.mubr.msk.bf16.mxu1 %vm1889_vm1, %v1888_v15 }
 0x47c   :  { %1682 = vmatprep.subr.bf16.mxu1 %v1888_v15 }
 0x47d   :  { %v1833_v25 = vpop.eup %1832 }
 0x47e   :  { %v299_v26 = vmul.f32 %v1833_v25, %v1829_v13  ;;  %v168_v25 = vld [vmem:[%s2302_s5 + $0x4] sm:$0xf] }
 0x480   :  { %v301_v28 = vpack.c.bf16 %v299_v26, %v299_v26  ;;  %v629_v26 = vsel %vm307_vm4, %v168_v25, 0 }
 0x482   :  { %1667 = vmatmul.mubr.msk.bf16.vlgmr.msra.gmra.mxu0 %vm176_vm2, %v301_v28  ;;  %1673 = vmatmul.mubr.msk.bf16.vlgmr.msra.gmra.mxu1 %vm176_vm2, %v401_v29 }
 0x483   :  { %1677 = vmatpush3.bf16.xpose.msra.mxu0 %v458_v30  ;;  %1678 = vmatprep.mubr.msk.bf16.mxu0 %vm1889_vm1, %v1888_v15 }
 0x484   :  { %1688 = vmatprep.subr.bf16.mxu0 %v1888_v15  ;;  %1684 = vmatprep.mubr.msk.bf16.mxu1 %vm1889_vm1, %v1888_v15 }
 0x48a   :  { %1679 = vmatmul.mubr.msk.bf16.vlgmr.msra.gmra.mxu0 %vm176_vm2, %v451_v31 }
 0x48b   :  { %1690 = vmatprep.mubr.msk.bf16.mxu0 %vm1889_vm1, %v1888_v15 }
 0x53a   :  { %v2074_v32 = vpop.f32.mrf.mxu1 }
 0x53c   :  { %v1662_v33 = vpop.f32.mrf.mxu1 }
 0x53e   :  { %v348_v34 = vpop.f32.mrf.mxu1 }
 0x540   :  { %v1663_v35 = vpop.f32.mrf.mxu1 }
 0x542   :  { %v2076_v36 = vpop.f32.mrf.mxu0  ;;  %v444_v37 = vpop.f32.mrf.mxu1 }
 0x543   :  { %v399_v39 = vpack.c.bf16 %v2076_v36, %v2074_v32  ;;  %v500_v40 = vmul.f32 0.35355338, %v444_v37 }
 0x544   :  { %v1668_v41 = vpop.f32.mrf.mxu0  ;;  %v1674_v43 = vpop.f32.mrf.mxu1 }
 0x545   :  { %v502_v44 = vsel %vm2036_vm3, %v500_v40, -1e+30 }
 0x546   :  { %v396_v45 = vpop.f32.mrf.mxu0  ;;  %v447_v46 = vpop.f32.mrf.mxu1  ;;  %v504_v47 = vsel %vm176_vm2, %v502_v44, -inf }
 0x547   :  { %505 = vmax.xlane.f32.xlu0 %v504_v47 }
 0x548   :  { %v1669_v48 = vpop.f32.mrf.mxu0  ;;  %v1675_v49 = vpop.f32.mrf.mxu1 }
 0x54a   :  { %v494_v50 = vpop.f32.mrf.mxu0 }
 0x54b   :  { %v501_v52 = vmul.f32 0.35355338, %v494_v50 }
 0x54c   :  { %v1680_v53 = vpop.f32.mrf.mxu0 }
 0x54d   :  { %v503_v54 = vsel %vm2036_vm3, %v501_v52, -1e+30 }
 0x54e   :  { %v497_v55 = vpop.f32.mrf.mxu0  ;;  %v507_v56 = vsel %vm176_vm2, %v503_v54, -inf }
 0x54f   :  { %508 = vmax.xlane.f32.xlu1 %v507_v56 }
 0x550   :  { %v1681_v57 = vpop.f32.mrf.mxu0 }
 0x560   :  { %576 = vrot.lane.b32.xlu1 %v2021_v42, %s1894_s21 }
 0x564   :  { %721 = vrot.lane.b32.xlu1 %v2018_v38, %s1895_s22 }
 0x568   :  { %771 = vrot.lane.b32.xlu1 %v2021_v42, %s1895_s22 }
 0x56c   :  { %769 = vrot.lane.b32.xlu1 %v2021_v42, %s1896_s23 }
 0x5d0   :  { %v506_v58 = vpop.xlane.xlu0 %505 }
 0x5d1   :  { %v510_v59 = vsub.f32 %v502_v44, %v506_v58 }
 0x5d3   :  { %v512_v60 = vmul.f32 1.442695, %v510_v59 }
 0x5d5   :  { %1834 = vpow2.f32 %v512_v60 }
 0x5d8   :  { %v509_v61 = vpop.xlane.xlu1 %508 }
 0x5d9   :  { %v511_v62 = vsub.f32 %v503_v54, %v509_v61 }
 0x5db   :  { %v514_v63 = vmul.f32 1.442695, %v511_v62 }
 0x5dc   :  { %v577_v2 = vpop.permute.xlu1 %576 }
 0x5dd   :  { %1836 = vpow2.f32 %v514_v63  ;;  %v582_v3 = vsel %vm307_vm4, %v577_v2, 0 }
 0x5de   :  { %1689 = vmatpush3.bf16.msra.mxu0 %v582_v3 }
 0x5df   :  { %1700 = vmatprep.subr.bf16.mxu0 %v1888_v15 }
 0x5e0   :  { %v722_v21 = vpop.permute.xlu1 %721 }
 0x5e1   :  { %v727_v34 = vsel %vm176_vm2, %v722_v21, 0 }
 0x5e2   :  { %v1835_v4 = vpop.eup %1834 }
 0x5e3   :  { %v516_v5 = vsel %vm176_vm2, %v1835_v4, 0.0 }
 0x5e4   :  { %517 = vadd.xlane.f32.xlu0 %v516_v5  ;;  %v772_v22 = vpop.permute.xlu1 %771 }
 0x5e5   :  { %v777_v23 = vsel %vm176_vm2, %v772_v22, 0 }
 0x5e8   :  { %v770_v24 = vpop.permute.xlu1 %769 }
 0x5ea   :  { %v1837_v6 = vpop.eup %1836 }
 0x5eb   :  { %v519_v7 = vsel %vm176_vm2, %v1837_v6, 0.0 }
 0x5ec   :  { %520 = vadd.xlane.f32.xlu0 %v519_v7 }
 0x602   :  { %528 = vrot.lane.b32.xlu0 %v2018_v38, %s1894_s21 }
 0x606   :  { %719 = vrot.lane.b32.xlu0 %v2018_v38, %s1896_s23 }
 0x66d   :  { %v518_v8 = vpop.xlane.xlu0 %517 }
 0x66e   :  { %1838 = vrcp.f32 %v518_v8 }
 0x675   :  { %v521_v9 = vpop.xlane.xlu0 %520 }
 0x676   :  { %1840 = vrcp.f32 %v521_v9 }
 0x679   :  { %v529_v10 = vpop.permute.xlu0 %528 }
 0x67a   :  { %v534_v11 = vsel %vm307_vm4, %v529_v10, 0 }
 0x67b   :  { %v1839_v12 = vpop.eup %1838  ;;  %1683 = vmatpush3.bf16.msra.mxu1 %v534_v11 }
 0x67c   :  { %v524_v13 = vmul.f32 %v1839_v12, %v1835_v4  ;;  %1694 = vmatprep.subr.bf16.mxu1 %v1888_v15 }
 0x67e   :  { %v526_v14 = vpack.c.bf16 %v524_v13, %v524_v13 }
 0x680   :  { %1685 = vmatmul.mubr.msk.bf16.vlgmr.msra.gmra.mxu1 %vm176_vm2, %v526_v14 }
 0x681   :  { %1696 = vmatprep.mubr.msk.bf16.mxu1 %vm1889_vm1, %v1888_v15  ;;  %1695 = vmatpush3.bf16.msra.mxu1 %v629_v26 }
 0x682   :  { %1706 = vmatprep.subr.bf16.mxu1 %v1888_v15 }
 0x683   :  { %v1841_v16 = vpop.eup %1840 }
 0x684   :  { %v525_v18 = vmul.f32 %v1841_v16, %v1837_v6 }
 0x686   :  { %v527_v19 = vpack.c.bf16 %v525_v18, %v525_v18 }
 0x688   :  { %1691 = vmatmul.mubr.msk.bf16.vlgmr.msra.gmra.mxu0 %vm176_vm2, %v527_v19 }
 0x689   :  { %1701 = vmatpush3.bf16.msra.mxu0 %v676_v20  ;;  %1702 = vmatprep.mubr.msk.bf16.mxu0 %vm1889_vm1, %v1888_v15 }
 0x68a   :  { %1712 = vmatprep.subr.bf16.mxu0 %v1888_v15 }
 0x690   :  { %1703 = vmatmul.mubr.msk.bf16.vlgmr.msra.gmra.mxu0 %vm176_vm2, %v399_v39  ;;  %v720_v39 = vpop.permute.xlu0 %719 }
 0x691   :  { %1713 = vmatpush3.bf16.xpose.msra.mxu0 %v777_v23  ;;  %1714 = vmatprep.mubr.msk.bf16.mxu0 %vm1889_vm1, %v1888_v15 }
 0x692   :  { %1724 = vmatprep.subr.bf16.mxu0 %v1888_v15 }
 0x698   :  { %1715 = vmatmul.mubr.msk.bf16.vlgmr.msra.gmra.mxu0 %vm176_vm2, %v770_v24 }
 0x699   :  { %1726 = vmatprep.mubr.msk.bf16.mxu0 %vm1889_vm1, %v1888_v15 }
 0x740   :  { %v570_v27 = vpop.f32.mrf.mxu1 }
 0x742   :  { %v1686_v28 = vpop.f32.mrf.mxu1 }
 0x744   :  { %v573_v29 = vpop.f32.mrf.mxu1 }
 0x746   :  { %v1687_v30 = vpop.f32.mrf.mxu1 }
 0x748   :  { %v618_v31 = vpop.f32.mrf.mxu0 }
 0x749   :  { %v624_v32 = vpack.c.bf16 %v618_v31, %v570_v27  ;;  %v169_v31 = vld [vmem:[%s2302_s5 + $0x8] sm:$0xf] }
 0x74a   :  { %v1692_v33 = vpop.f32.mrf.mxu0 }
 0x74b   :  { %1697 = vmatmul.mubr.msk.bf16.vlgmr.msra.gmra.mxu1 %vm176_vm2, %v624_v32  ;;  %v948_v32 = vsel %vm307_vm4, %v169_v31, 0 }
 0x74c   :  { %1707 = vmatpush3.bf16.xpose.msra.mxu1 %v727_v34  ;;  %v621_v35 = vpop.f32.mrf.mxu0  ;;  %1708 = vmatprep.mubr.msk.bf16.mxu1 %vm1889_vm1, %v1888_v15 }
 0x74d   :  { %1718 = vmatprep.subr.bf16.mxu1 %v1888_v15 }
 0x74e   :  { %v1693_v36 = vpop.f32.mrf.mxu0 }
 0x750   :  { %v2130_v37 = vpop.f32.mrf.mxu0 }
 0x752   :  { %v1704_v40 = vpop.f32.mrf.mxu0 }
 0x753   :  { %1709 = vmatmul.mubr.msk.bf16.vlgmr.msra.gmra.mxu1 %vm176_vm2, %v720_v39 }
 0x754   :  { %v2133_v41 = vpop.f32.mrf.mxu0  ;;  %1720 = vmatprep.mubr.msk.bf16.mxu1 %vm1889_vm1, %v1888_v15 }
 0x756   :  { %v1705_v43 = vpop.f32.mrf.mxu0 }
 0x758   :  { %v813_v44 = vpop.f32.mrf.mxu0 }
 0x759   :  { %v820_v45 = vmul.f32 0.35355338, %v813_v44 }
 0x75a   :  { %v1716_v46 = vpop.f32.mrf.mxu0 }
 0x75b   :  { %v822_v47 = vsel %vm2036_vm3, %v820_v45, -1e+30 }
 0x75c   :  { %v816_v48 = vpop.f32.mrf.mxu0  ;;  %v826_v49 = vsel %vm176_vm2, %v822_v47, -inf }
 0x75d   :  { %827 = vmax.xlane.f32.xlu1 %v826_v49 }
 0x75e   :  { %v1717_v50 = vpop.f32.mrf.mxu0 }
 0x76e   :  { %895 = vrot.lane.b32.xlu1 %v2021_v42, %s1897_s28 }
 0x772   :  { %995 = vrot.lane.b32.xlu1 %v2018_v38, %s1898_s0 }
 0x776   :  { %1045 = vrot.lane.b32.xlu1 %v2021_v42, %s1898_s0 }
 0x77a   :  { %1043 = vrot.lane.b32.xlu1 %v2021_v42, %s1899_s29 }
 0x7e6   :  { %v828_v52 = vpop.xlane.xlu1 %827 }
 0x7e7   :  { %v830_v55 = vsub.f32 %v822_v47, %v828_v52 }
 0x7e9   :  { %v833_v56 = vmul.f32 1.442695, %v830_v55 }
 0x7ea   :  { %v896_v53 = vpop.permute.xlu1 %895 }
 0x7eb   :  { %v901_v54 = vsel %vm307_vm4, %v896_v53, 0  ;;  %1842 = vpow2.f32 %v833_v56 }
 0x7ec   :  { %1725 = vmatpush3.bf16.msra.mxu0 %v901_v54 }
 0x7ed   :  { %1736 = vmatprep.subr.bf16.mxu0 %v1888_v15 }
 0x7ee   :  { %v996_v17 = vpop.permute.xlu1 %995 }
 0x7ef   :  { %v1001_v19 = vsel %vm176_vm2, %v996_v17, 0 }
 0x7f2   :  { %v1046_v44 = vpop.permute.xlu1 %1045 }
 0x7f3   :  { %v1051_v48 = vsel %vm176_vm2, %v1046_v44, 0 }
 0x7f6   :  { %v1044_v52 = vpop.permute.xlu1 %1043 }
 0x7f8   :  { %v1843_v5 = vpop.eup %1842 }
 0x7f9   :  { %v838_v7 = vsel %vm176_vm2, %v1843_v5, 0.0 }
 0x80b   :  { %v2148_v57 = vpop.f32.mrf.mxu1 }
 0x80d   :  { %v1698_v58 = vpop.f32.mrf.mxu1 }
 0x80f   :  { %v2150_v59 = vpop.f32.mrf.mxu1 }
 0x811   :  { %v1699_v60 = vpop.f32.mrf.mxu1 }
 0x812   :  { %v713_v60 = vadd.f32 %v2130_v37, %v2148_v57 }
 0x813   :  { %v763_v61 = vpop.f32.mrf.mxu1 }
 0x814   :  { %v819_v62 = vmul.f32 0.35355338, %v763_v61 }
 0x815   :  { %v1710_v63 = vpop.f32.mrf.mxu1 }
 0x816   :  { %v821_v2 = vsel %vm2036_vm3, %v819_v62, -1e+30 }
 0x817   :  { %v766_v3 = vpop.f32.mrf.mxu1  ;;  %v823_v4 = vsel %vm176_vm2, %v821_v2, -inf }
 0x818   :  { %824 = vmax.xlane.f32.xlu0 %v823_v4 }
 0x819   :  { %v1711_v6 = vpop.f32.mrf.mxu1 }
 0x81c   :  { %839 = vadd.xlane.f32.xlu0 %v838_v7 }
 0x8a1   :  { %v825_v8 = vpop.xlane.xlu0 %824 }
 0x8a2   :  { %v829_v9 = vsub.f32 %v821_v2, %v825_v8  ;;  %v716_v2 = vadd.f32 %v2133_v41, %v2150_v59 }
 0x8a4   :  { %v831_v10 = vmul.f32 1.442695, %v829_v9 }
 0x8a5   :  { %v840_v11 = vpop.xlane.xlu0 %839 }
 0x8a6   :  { %1844 = vpow2.f32 %v831_v10 }
 0x8a7   :  { %1846 = vrcp.f32 %v840_v11 }
 0x8b3   :  { %v1845_v12 = vpop.eup %1844 }
 0x8b4   :  { %v1847_v13 = vpop.eup %1846  ;;  %v835_v14 = vsel %vm176_vm2, %v1845_v12, 0.0 }
 0x8b5   :  { %836 = vadd.xlane.f32.xlu0 %v835_v14  ;;  %v844_v16 = vmul.f32 %v1847_v13, %v1843_v5 }
 0x8b7   :  { %v846_v18 = vpack.c.bf16 %v844_v16, %v844_v16 }
 0x8b9   :  { %1727 = vmatmul.mubr.msk.bf16.vlgmr.msra.gmra.mxu0 %vm176_vm2, %v846_v18 }
 0x8ba   :  { %1737 = vmatpush3.bf16.xpose.msra.mxu0 %v1001_v19  ;;  %1738 = vmatprep.mubr.msk.bf16.mxu0 %vm1889_vm1, %v1888_v15 }
 0x8bb   :  { %1748 = vmatprep.subr.bf16.mxu0 %v1888_v15 }
 0x8cb   :  { %847 = vrot.lane.b32.xlu0 %v2018_v38, %s1897_s28 }
 0x8cf   :  { %993 = vrot.lane.b32.xlu0 %v2018_v38, %s1899_s29 }
 0x93e   :  { %v837_v20 = vpop.xlane.xlu0 %836 }
 0x93f   :  { %1848 = vrcp.f32 %v837_v20 }
 0x942   :  { %v848_v21 = vpop.permute.xlu0 %847 }
 0x943   :  { %v853_v22 = vsel %vm307_vm4, %v848_v21, 0 }
 0x944   :  { %1719 = vmatpush3.bf16.msra.mxu1 %v853_v22 }
 0x945   :  { %1730 = vmatprep.subr.bf16.mxu1 %v1888_v15 }
 0x946   :  { %v994_v23 = vpop.permute.xlu0 %993 }
 0x947   :  { %1739 = vmatmul.mubr.msk.bf16.vlgmr.msra.gmra.mxu0 %vm176_vm2, %v994_v23 }
 0x948   :  { %1750 = vmatprep.mubr.msk.bf16.mxu0 %vm1889_vm1, %v1888_v15 }
 0x94c   :  { %v1849_v24 = vpop.eup %1848 }
 0x94d   :  { %v843_v25 = vmul.f32 %v1849_v24, %v1845_v12  ;;  %v170_v24 = vld [vmem:[%s2302_s5 + $0xc] sm:$0xf] }
 0x94f   :  { %v845_v26 = vpack.c.bf16 %v843_v25, %v843_v25  ;;  %v1222_v25 = vsel %vm307_vm4, %v170_v24, 0 }
 0x951   :  { %1721 = vmatmul.mubr.msk.bf16.vlgmr.msra.gmra.mxu1 %vm176_vm2, %v845_v26 }
 0x952   :  { %1732 = vmatprep.mubr.msk.bf16.mxu1 %vm1889_vm1, %v1888_v15  ;;  %1731 = vmatpush3.bf16.msra.mxu1 %v948_v32 }
 0x953   :  { %1742 = vmatprep.subr.bf16.mxu1 %v1888_v15 }
 0x979   :  { %v937_v27 = vpop.f32.mrf.mxu0 }
 0x97b   :  { %v1728_v28 = vpop.f32.mrf.mxu0 }
 0x97d   :  { %v940_v29 = vpop.f32.mrf.mxu0 }
 0x97f   :  { %v1729_v30 = vpop.f32.mrf.mxu0 }
 0xa07   :  { %v1037_v33 = vpop.f32.mrf.mxu0 }
 0xa08   :  { %v1093_v34 = vmul.f32 0.35355338, %v1037_v33 }
 0xa09   :  { %v1740_v35 = vpop.f32.mrf.mxu0 }
 0xa0a   :  { %v1095_v36 = vsel %vm2036_vm3, %v1093_v34, -1e+30 }
 0xa0b   :  { %v1040_v39 = vpop.f32.mrf.mxu0  ;;  %v1097_v40 = vsel %vm176_vm2, %v1095_v36, -inf }
 0xa0c   :  { %1098 = vmax.xlane.f32.xlu0 %v1097_v40  ;;  %v1567_v39 = vld [vmem:[%s2303_s6] ss:$0 sm:$0xff]  ;;  %s1530_s6 = sshll.u32 %s1901_s17, 4  ;;  %s1531_s6 = int_to_ptr.vmem [resolvable:$true] %s1530_s6 }
 0xa0d   :  { %v1741_v43 = vpop.f32.mrf.mxu0  ;;  %s1866_s18 = scalar_lea.vmem %s1531_s6, 256  ;;  %p1871_p1 = scmp.lt.s32.totalorder %s1531_s6, %s1531_s6 }
 0xa0e   :  { %p1867_p0 = scmp.ne.s32.totalorder %s1531_s6, %s1866_s18  ;;  %p1872_p2 = scmp.lt.s32.totalorder %s1866_s18, %s1866_s18 }
 0xa10   :  { %p1873_p3 = por %p1872_p2, %p1871_p1 }
 0xa11   :  { %v889_v45 = vpop.f32.mrf.mxu1 }
 0xa12   :  { %v943_v46 = vpack.c.bf16 %v937_v27, %v889_v45  ;;  %p1874_p4 = pnand %p1873_p3, %p1867_p0 }
 0xa13   :  { %v1722_v47 = vpop.f32.mrf.mxu1 }
 0xa14   :  { %1733 = vmatmul.mubr.msk.bf16.vlgmr.msra.gmra.mxu1 %vm176_vm2, %v943_v46 }
 0xa15   :  { %1743 = vmatpush3.bf16.xpose.msra.mxu1 %v1051_v48  ;;  %v892_v49 = vpop.f32.mrf.mxu1  ;;  %1744 = vmatprep.mubr.msk.bf16.mxu1 %vm1889_vm1, %v1888_v15 }
 0xa16   :  { %1754 = vmatprep.subr.bf16.mxu1 %v1888_v15 }
 0xa17   :  { %v1723_v50 = vpop.f32.mrf.mxu1 }
 0xa1c   :  { %1745 = vmatmul.mubr.msk.bf16.vlgmr.msra.gmra.mxu1 %vm176_vm2, %v1044_v52 }
 0xa1d   :  { %1756 = vmatprep.mubr.msk.bf16.mxu1 %vm1889_vm1, %v1888_v15 }
 0xa95   :  { %v1099_v53 = vpop.xlane.xlu0 %1098 }
 0xa96   :  { %v1103_v54 = vsub.f32 %v1095_v36, %v1099_v53 }
 0xa98   :  { %v1105_v55 = vmul.f32 1.442695, %v1103_v54 }
 0xa9a   :  { %1850 = vpow2.f32 %v1105_v55 }
 0xaa7   :  { %v1851_v56 = vpop.eup %1850 }
 0xaa8   :  { %v1109_v58 = vsel %vm176_vm2, %v1851_v56, 0.0 }
 0xaa9   :  { %1110 = vadd.xlane.f32.xlu0 %v1109_v58 }
 0xad4   :  { %v984_v61 = vpop.f32.mrf.mxu1 }
 0xad5   :  { %v991_v62 = vadd.f32 %v984_v61, %v713_v60 }
 0xad6   :  { %v1734_v63 = vpop.f32.mrf.mxu1 }
 0xad7   :  { %v1812_v63 = vld [vmem:[%s2306_s9 + $0x8] sm:$0xff]  }
 0xad8   :  { %v987_v3 = vpop.f32.mrf.mxu1 }
 0xad9   :  { %v2195_v4 = vadd.f32 %v987_v3, %v716_v2  ;;  %v1813_v2 = vld [vmem:[%s2306_s9] sm:$0xff]  }
 0xada   :  { %v1735_v5 = vpop.f32.mrf.mxu1 }
 0xadc   :  { %v1087_v6 = vpop.f32.mrf.mxu1 }
 0xadd   :  { %v1094_v7 = vmul.f32 0.35355338, %v1087_v6 }
 0xade   :  { %v1746_v8 = vpop.f32.mrf.mxu1 }
 0xadf   :  { %v1096_v9 = vsel %vm2036_vm3, %v1094_v7, -1e+30 }
 0xae0   :  { %v1090_v10 = vpop.f32.mrf.mxu1  ;;  %v1100_v11 = vsel %vm176_vm2, %v1096_v9, -inf }
 0xae1   :  { %1101 = vmax.xlane.f32.xlu1 %v1100_v11  ;;  %v1568_v11 = vld [vmem:[%s2304_s7] ss:$0 sm:$0xff] }
 0xae2   :  { %v1747_v37 = vpop.f32.mrf.mxu1 }
 0xaf2   :  { %1169 = vrot.lane.b32.xlu1 %v2021_v42, %s1900_s3 }
 0xb32   :  { %v1111_v16 = vpop.xlane.xlu0 %1110 }
 0xb6a   :  { %v1102_v57 = vpop.xlane.xlu1 %1101 }
 0xb6b   :  { %v1104_v41 = vsub.f32 %v1096_v9, %v1102_v57 }
 0xb6d   :  { %v1107_v59 = vmul.f32 1.442695, %v1104_v41 }
 0xb6e   :  { %v1170_v12 = vpop.permute.xlu1 %1169 }
 0xb6f   :  { %1852 = vpow2.f32 %v1107_v59  ;;  %v1175_v13 = vsel %vm307_vm4, %v1170_v12, 0  ;;  %v1569_v59 = vld [vmem:[%s2305_s8] ss:$0 sm:$0xff] }
 0xb70   :  { %1755 = vmatpush3.bf16.msra.mxu1 %v1175_v13  ;;  %1854 = vrcp.f32 %v1111_v16  ;;  %v1814_v16 = vld [vmem:[%s2308_s11 + $0x38] sm:$0xff]  }
 0xb71   :  { %1766 = vmatprep.subr.bf16.mxu1 %v1888_v15 }
 0xb7c   :  { %v1853_v51 = vpop.eup %1852 }
 0xb7d   :  { %v1112_v14 = vsel %vm176_vm2, %v1853_v51, 0.0  ;;  %v1855_v17 = vpop.eup %1854 }
 0xb7e   :  { %1113 = vadd.xlane.f32.xlu0 %v1112_v14  ;;  %v1117_v18 = vmul.f32 %v1855_v17, %v1851_v56  ;;  %v1815_v17 = vld [vmem:[%s2308_s11 + $0x30] sm:$0xff]  }
 0xb80   :  { %v1119_v21 = vpack.c.bf16 %v1117_v18, %v1117_v18  ;;  %v1817_v18 = vld [vmem:[%s2308_s11 + $0x20] sm:$0xff]  }
 0xb94   :  { %1121 = vrot.lane.b32.xlu0 %v2018_v38, %s1900_s3 }
 0xc07   :  { %v1114_v42 = vpop.xlane.xlu0 %1113 }
 0xc08   :  { %1856 = vrcp.f32 %v1114_v42  ;;  %v1816_v42 = vld [vmem:[%s2308_s11 + $0x28] sm:$0xff]  }
 0xc0b   :  { %v1122_v19 = vpop.permute.xlu0 %1121 }
 0xc0c   :  { %v1127_v20 = vsel %vm307_vm4, %v1122_v19, 0  ;;  %v1818_v19 = vld [vmem:[%s2308_s11 + $0x18] sm:$0xff]  }
 0xc0d   :  { %1749 = vmatpush3.bf16.msra.mxu0 %v1127_v20  ;;  %v1819_v20 = vld [vmem:[%s2308_s11 + $0x10] sm:$0xff]  }
 0xc0e   :  { %1760 = vmatprep.subr.bf16.mxu0 %v1888_v15 }
 0xc10   :  { %1751 = vmatmul.mubr.msk.bf16.vlgmr.msra.gmra.mxu0 %vm176_vm2, %v1119_v21  ;;  %v1820_v21 = vld [vmem:[%s2308_s11 + $0x8] sm:$0xff]  }
 0xc11   :  { %1762 = vmatprep.mubr.msk.bf16.mxu0 %vm1889_vm1, %v1888_v15  ;;  %1761 = vmatpush3.bf16.msra.mxu0 %v1222_v25 }
 0xc12   :  { %1774 = vmatprep.subr.bf16.mxu0 %v1888_v15 }
 0xc15   :  { %v1857_v22 = vpop.eup %1856 }
 0xc16   :  { %v1118_v38 = vmul.f32 %v1857_v22, %v1853_v51  ;;  %v1821_v22 = vld [vmem:[%s2308_s11] sm:$0xff]  }
 0xc18   :  { %v1120_v23 = vpack.c.bf16 %v1118_v38, %v1118_v38  ;;  %v1570_v38 = vld [vmem:[%s2307_s10] ss:$0 sm:$0xff] }
 0xc1a   :  { %1757 = vmatmul.mubr.msk.bf16.vlgmr.msra.gmra.mxu1 %vm176_vm2, %v1120_v23 }
 0xc1b   :  { %1770 = vmatprep.mubr.msk.bf16.mxu1 %vm1889_vm1, %v1888_v15  ;;  %1767 = vmatpush3.bf16.msra.mxu1 %v1812_v63 }
 0xc1c   :  { %1768 = vmatprep.subr.bf16.mxu1 %v1888_v15 }
 0xc1f   :  { %1769 = vmatpush3.bf16.msra.mxu1 %v1813_v2 }
 0xcd0   :  { %v1163_v26 = vpop.f32.mrf.mxu0 }
 0xcd2   :  { %v1752_v27 = vpop.f32.mrf.mxu0 }
 0xcd4   :  { %v1166_v28 = vpop.f32.mrf.mxu0 }
 0xcd6   :  { %v1753_v29 = vpop.f32.mrf.mxu0 }
 0xcda   :  { %v1211_v30 = vpop.f32.mrf.mxu1 }
 0xcdb   :  { %v1217_v31 = vpack.c.bf16 %v1211_v30, %v1163_v26 }
 0xcdc   :  { %v1758_v32 = vpop.f32.mrf.mxu1 }
 0xcdd   :  { %1763 = vmatmul.mubr.msk.bf16.vlgmr.msra.gmra.mxu0 %vm176_vm2, %v1217_v31 }
 0xcde   :  { %v1214_v33 = vpop.f32.mrf.mxu1  ;;  %1790 = vmatprep.mubr.msk.bf16.mxu0 %vm1889_vm1, %v1888_v15  ;;  %1775 = vmatpush3.bf16.msra.mxu0 %v1814_v16 }
 0xcdf   :  { %1776 = vmatprep.subr.bf16.mxu0 %v1888_v15 }
 0xce0   :  { %v1759_v34 = vpop.f32.mrf.mxu1 }
 0xce2   :  { %1777 = vmatpush3.bf16.msra.mxu0 %v1815_v17 }
 0xce3   :  { %1778 = vmatprep.subr.bf16.mxu0 %v1888_v15 }
 0xce6   :  { %1779 = vmatpush3.bf16.msra.mxu0 %v1816_v42 }
 0xce7   :  { %1780 = vmatprep.subr.bf16.mxu0 %v1888_v15 }
 0xcea   :  { %1781 = vmatpush3.bf16.msra.mxu0 %v1817_v18 }
 0xceb   :  { %1782 = vmatprep.subr.bf16.mxu0 %v1888_v15 }
 0xcee   :  { %1783 = vmatpush3.bf16.msra.mxu0 %v1818_v19 }
 0xcef   :  { %1784 = vmatprep.subr.bf16.mxu0 %v1888_v15 }
 0xcf2   :  { %1785 = vmatpush3.bf16.msra.mxu0 %v1819_v20 }
 0xcf3   :  { %1786 = vmatprep.subr.bf16.mxu0 %v1888_v15 }
 0xcf6   :  { %1787 = vmatpush3.bf16.msra.mxu0 %v1820_v21 }
 0xcf7   :  { %1788 = vmatprep.subr.bf16.mxu0 %v1888_v15 }
 0xcfa   :  { %1789 = vmatpush3.bf16.msra.mxu0 %v1821_v22 }
 0xd9d   :  { %v1258_v35 = vpop.f32.mrf.mxu0 }
 0xd9e   :  { %v1265_v36 = vadd.f32 %v1258_v35, %v991_v62 }
 0xd9f   :  { %v1764_v40 = vpop.f32.mrf.mxu0 }
 0xda0   :  { %v1267_v43 = vadd.f32 %v1265_v36, %v1977_v0 }
 0xda1   :  { %v1261_v44 = vpop.f32.mrf.mxu0 }
 0xda2   :  { %v2225_v45 = vadd.f32 %v1567_v39, %v1267_v43  ;;  %v1266_v46 = vadd.f32 %v1261_v44, %v2195_v4 }
 0xda3   :  { %v1765_v47 = vpop.f32.mrf.mxu0 }
 0xda4   :  { %v1268_v48 = vadd.f32 %v1266_v46, %v1982_v1  ;;  %v1280_v49 = vsel %vm50_vm0, %v2225_v45, 0.0 }
 0xda5   :  { %1281 = vadd.xlane.f32.xlu1 %v1280_v49 }
 0xda6   :  { %v2231_v50 = vadd.f32 %v1567_v39, %v1268_v48 }
 0xda8   :  { %v1283_v52 = vsel %vm50_vm0, %v2231_v50, 0.0 }
 0xda9   :  { %1284 = vadd.xlane.f32.xlu0 %v1283_v52 }
 0xe2e   :  { %v1282_v53 = vpop.xlane.xlu1 %1281 }
 0xe2f   :  { %v1286_v0 = vmul.f32 0.03125, %v1282_v53 }
 0xe31   :  { %v1288_v54 = vsub.f32 %v2225_v45, %v1286_v0  ;;  %v1574_v0 = vld [vmem:[%s2309_s12] ss:$0 sm:$0xff] }
 0xe32   :  { %v1285_v55 = vpop.xlane.xlu0 %1284 }
 0xe33   :  { %v1287_v56 = vmul.f32 0.03125, %v1285_v55  ;;  %v1290_v58 = vmul.f32 %v1288_v54, %v1288_v54 }
 0xe35   :  { %v1289_v60 = vsub.f32 %v2231_v50, %v1287_v56  ;;  %v1292_v1 = vsel %vm50_vm0, %v1290_v58, 0.0 }
 0xe36   :  { %1293 = vadd.xlane.f32.xlu0 %v1292_v1 }
 0xe37   :  { %v1291_v61 = vmul.f32 %v1289_v60, %v1289_v60 }
 0xe39   :  { %v1295_v62 = vsel %vm50_vm0, %v1291_v61, 0.0 }
 0xe3a   :  { %1296 = vadd.xlane.f32.xlu1 %v1295_v62 }
 0xebf   :  { %v1294_v3 = vpop.xlane.xlu0 %1293 }
 0xec0   :  { %v1298_v4 = vmul.f32 0.03125, %v1294_v3 }
 0xec2   :  { %v1300_v5 = vadd.f32 1e-05, %v1298_v4 }
 0xec3   :  { %v1297_v6 = vpop.xlane.xlu1 %1296 }
 0xec4   :  { %1858 = vrsqrt.f32 %v1300_v5  ;;  %v1299_v7 = vmul.f32 0.03125, %v1297_v6 }
 0xec6   :  { %v1301_v8 = vadd.f32 1e-05, %v1299_v7 }
 0xec8   :  { %1860 = vrsqrt.f32 %v1301_v8 }
 0xed1   :  { %v1859_v9 = vpop.eup %1858 }
 0xed2   :  { %v1304_v10 = vmul.f32 %v1859_v9, %v1288_v54 }
 0xed4   :  { %v1312_v41 = vmul.f32 %v1568_v11, %v1304_v10 }
 0xed5   :  { %v1861_v37 = vpop.eup %1860 }
 0xed6   :  { %v1305_v57 = vmul.f32 %v1861_v37, %v1289_v60  ;;  %v1320_v13 = vadd.f32 %v1569_v59, %v1312_v41 }
 0xed8   :  { %v1313_v12 = vmul.f32 %v1568_v11, %v1305_v57 }
 0xeda   :  { %v1321_v51 = vadd.f32 %v1569_v59, %v1313_v12 }
 0xedc   :  { %v1322_v14 = vpack.c.bf16 %v1321_v51, %v1320_v13 }
 0xede   :  { %1771 = vmatmul.mubr.msk.bf16.vlgmr.msra.gmra.mxu1 %vm50_vm0, %v1322_v14 }
 0xf9e   :  { %v1383_v23 = vpop.f32.mrf.mxu1 }
 0xf9f   :  { %v1384_v24 = vadd.f32 %v1570_v38, %v1383_v23 }
 0xfa0   :  { %v1772_v25 = vpop.f32.mrf.mxu1 }
 0xfa1   :  { %v1392_v26 = vmul.f32 0.044715, %v1384_v24  ;;  %v1390_v46 = vmul.f32 0.5, %v1384_v24 }
 0xfa2   :  { %v1386_v27 = vpop.f32.mrf.mxu1 }
 0xfa3   :  { %v1394_v28 = vmul.f32 %v1392_v26, %v1384_v24  ;;  %v1387_v29 = vadd.f32 %v1570_v38, %v1386_v27 }
 0xfa4   :  { %v1773_v30 = vpop.f32.mrf.mxu1 }
 0xfa5   :  { %v1396_v31 = vmul.f32 %v1394_v28, %v1384_v24  ;;  %v1393_v32 = vmul.f32 0.044715, %v1387_v29  ;;  %v1391_v47 = vmul.f32 0.5, %v1387_v29 }
 0xfa7   :  { %v1398_v33 = vadd.f32 %v1396_v31, %v1384_v24  ;;  %v1395_v34 = vmul.f32 %v1393_v32, %v1387_v29 }
 0xfa9   :  { %v1400_v35 = vmul.f32 0.7978846, %v1398_v33  ;;  %v1397_v36 = vmul.f32 %v1395_v34, %v1387_v29 }
 0xfab   :  { %1862 = vtanh.f32 %v1400_v35  ;;  %v1399_v15 = vadd.f32 %v1397_v36, %v1387_v29 }
 0xfad   :  { %v1401_v39 = vmul.f32 0.7978846, %v1399_v15 }
 0xfaf   :  { %1864 = vtanh.f32 %v1401_v39 }
 0xfb8   :  { %v1863_v40 = vpop.eup %1862 }
 0xfb9   :  { %v1404_v43 = vadd.f32 1.0, %v1863_v40 }
 0xfbb   :  { %v1406_v49 = vmul.f32 %v1404_v43, %v1390_v46 }
 0xfbc   :  { %v1865_v44 = vpop.eup %1864 }
 0xfbd   :  { %v1405_v48 = vadd.f32 1.0, %v1865_v44 }
 0xfbf   :  { %v1407_v52 = vmul.f32 %v1405_v48, %v1391_v47 }
 0xfc1   :  { %v1408_v53 = vpack.c.bf16 %v1407_v52, %v1406_v49 }
 0xfc3   :  { %1791 = vmatmul.mubr.bf16.vlgmr.msra.gmra.mxu0 %v1408_v53 }
0x1083   :  { %v1514_v54 = vpop.f32.mrf.mxu0 }
0x1084   :  { %v1515_v55 = vadd.f32 %v1574_v0, %v1514_v54 }
0x1085   :  { %v1792_v56 = vpop.f32.mrf.mxu0 }
0x1086   :  { %v1521_v58 = vadd.f32 %v1515_v55, %v2225_v45 }
0x1087   :  { %v1517_v60 = vpop.f32.mrf.mxu0 }
0x1088   :  { %1523 = vst.msk [vmem:[#allocation2] sm:$0xff] %vm50_vm0, %v1521_v58  ;;  %v1518_v1 = vadd.f32 %v1574_v0, %v1517_v60 }
0x1089   :  { %v1793_v61 = vpop.f32.mrf.mxu0 }
0x108a   :  { %v1522_v62 = vadd.f32 %v1518_v1, %v2231_v50 }
0x108c   :  { %1524 = vst.msk [vmem:[#allocation2 + $0x8] sm:$0xff] %vm50_vm0, %v1522_v62 }
0x108d   :  { %1877 = shalt.err (!%p1874_p4)
}
0x108e   :  { %s1902_s12 = smov 128   ;;  %s1903_s19 = smov 8  }
0x108f   :  { %1536 = dma.vmem_to_hbm [thread:$0]  %s1531_s6, 256, %s2310_s13, [#allocation3], %s1902_s12, %s1902_s12, %s1903_s19  }
0x1090   :  { %1886 = dma.done.wait [#allocation3], 256  }
0x1091   :  { %1887 = vsyncadd [#allocation3], 4294967040 }
0x1092   :  { %1540 = vsyncpa [#allocation3], 1 }

</bundles_post_ra>
